<compile_context>
chip_gen: v6e
topology: v6e:2x2x1
jax: 0.10.0
libtpu: 0.0.40
codegen_flags: <defaults>
</compile_context>

<pallas_src>
import jax
import jax.numpy as jnp
from jax.experimental import pallas as pl
from jax.experimental.pallas import tpu as pltpu


# -----------------------------------------------------------------------------
# Model hyper-parameters (small, consistent with the module's __init__)
# -----------------------------------------------------------------------------
BATCH = 2
SEQ = 8
INPUT_DIM = 16
HIDDEN = 32            # 4*HIDDEN == 128 -> all gates of one cell fit one lane tile
NUM_LAYERS = 2         # kernel below is written for exactly 2 stacked layers
SUBLANE = 8            # TPU sublane tile
GATES = 4 * HIDDEN     # 128

# Packed weight-slab row offsets (each section starts on an 8-row boundary so
# every static view is sublane-aligned).
ROW_WIH0 = 0                          # (D, 4H)   layer-0 input weights (g-scaled)
ROW_WHH0 = ROW_WIH0 + INPUT_DIM       # (H, 4H)   layer-0 recurrent weights
ROW_B0 = ROW_WHH0 + HIDDEN            # (1, 4H)   layer-0 bias (b_ih + b_hh)
ROW_W1 = ROW_B0 + SUBLANE             # (2H, 4H)  layer-1 stacked [wih1; whh1]
ROW_B1 = ROW_W1 + 2 * HIDDEN          # (1, 4H)   layer-1 bias
ROW_FC1W = ROW_B1 + SUBLANE           # (H, 4H)   fc[0] weight, zero-padded lanes
ROW_FC1B = ROW_FC1W + HIDDEN          # (1, 4H)   fc[0] bias, zero-padded lanes
ROW_FC2W = ROW_FC1B + SUBLANE         # (1, 4H)   fc[3] weight row, zero-padded
ROW_FC2B = ROW_FC2W + SUBLANE         # (1, 4H)   fc[3] bias broadcast over lanes
SLAB_ROWS = ROW_FC2B + SUBLANE        # 184 rows total (multiple of 8)


def lstm_classifier_kernel(x_ref, slab_ref, out_ref):
    B, T, D = x_ref.shape
    H = HIDDEN
    G = GATES

    # ----- static views into the packed weight slab (one DMA for all params) --
    wih0 = slab_ref[ROW_WIH0:ROW_WIH0 + D, :]         # (D, 4H)  g-cols pre-scaled x2
    whh0 = slab_ref[ROW_WHH0:ROW_WHH0 + H, :]         # (H, 4H)
    b0 = slab_ref[ROW_B0:ROW_B0 + 1, :]               # (1, 4H)
    w1 = slab_ref[ROW_W1:ROW_W1 + 2 * H, :]           # (2H, 4H) = [wih1; whh1]
    b1 = slab_ref[ROW_B1:ROW_B1 + 1, :]               # (1, 4H)

    def cell(gates, c):
        # Single EUP pass: g-gate pre-activations were pre-scaled by 2 in
        # prepare_params, so tanh(g) == 2*sigmoid(2*g) - 1 == 2*s_g - 1.
        # PyTorch gate order along the 4H axis: i, f, g, o.
        s = jax.nn.sigmoid(gates)                      # one full-width transcendental
        i = s[:, 0 * H:1 * H]
        f = s[:, 1 * H:2 * H]
        g = 2.0 * s[:, 2 * H:3 * H] - 1.0
        o = s[:, 3 * H:4 * H]
        c_new = f * c + i * g
        h_new = o * jnp.tanh(c_new)
        return h_new, c_new

    # ----- hoisted layer-0 input projection: one (B*T, D) @ (D, 4H) matmul ----
    x0p = jnp.dot(x_ref[...].reshape(B * T, D), wih0,
                  preferred_element_type=jnp.float32) + b0          # (B*T, 4H)
    x0p = x0p.reshape(B, T, G)                                       # (B, T, 4H)

    zeros = jnp.zeros((B, H), jnp.float32)
    h0, c0 = zeros, zeros
    h1, c1 = zeros, zeros

    # ----- interleaved (skewed-wavefront) stacked LSTM, fully unrolled --------
    for t in range(T):
        # layer 0: only h0 @ whh0 sits on the recurrent critical path
        pre0 = x0p[:, t, :]
        if t == 0:
            gates0 = pre0                               # h0 == 0 at t == 0
        else:
            gates0 = pre0 + jnp.dot(h0, whh0, preferred_element_type=jnp.float32)
        h0, c0 = cell(gates0, c0)

        # layer 1: fused input+recurrent projection, one (B,2H) @ (2H,4H) matmul
        hcat = jnp.concatenate([h0, h1], axis=1)                     # (B, 2H)
        gates1 = jnp.dot(hcat, w1, preferred_element_type=jnp.float32) + b1
        h1, c1 = cell(gates1, c1)
    # TODO(synk): inter-layer dropout (p=0.2) is a training-time op; eval forward is identity.

    # ----- FC head on the last top-layer hidden state --------------------------
    fc1w = slab_ref[ROW_FC1W:ROW_FC1W + H, :]          # (H, 4H), cols >= H//2 are 0
    fc1b = slab_ref[ROW_FC1B:ROW_FC1B + 1, :]          # (1, 4H)
    fc2w = slab_ref[ROW_FC2W:ROW_FC2W + 1, :]          # (1, 4H)
    fc2b = slab_ref[ROW_FC2B:ROW_FC2B + 1, :]          # (1, 4H) bias in every lane

    z = jnp.maximum(
        jnp.dot(h1, fc1w, preferred_element_type=jnp.float32) + fc1b, 0.0)  # ReLU
    # (dropout in the head is inference-mode identity)
    # N=1 output matmul as a VPU multiply + lane reduction (zero lanes drop out).
    logit = jnp.sum(z * fc2w, axis=-1, keepdims=True) + fc2b[:, 0:1]
    out_ref[...] = jax.nn.sigmoid(logit).astype(out_ref.dtype)


def prepare_params(params):
    """One-time weight re-layout (outside jit).

    Transposes, folds the two LSTM biases, stacks layer-1's input+recurrent
    weights, pre-scales the g-gate columns by 2 (single-sigmoid gate trick),
    zero-pads the FC head to full lane width, and packs everything into a
    single (SLAB_ROWS, 4H) f32 slab so the kernel needs only one weight DMA.
    """
    f32 = jnp.float32
    H = params["w_hh_l0"].shape[1]
    G = 4 * H
    H2 = params["fc1_w"].shape[0]

    def gscale(m):  # m: (K, 4H); scale the g-gate columns [2H:3H] by 2
        return m.at[:, 2 * H:3 * H].multiply(2.0)

    wih0 = gscale(params["w_ih_l0"].T.astype(f32))                           # (D, 4H)
    whh0 = gscale(params["w_hh_l0"].T.astype(f32))                           # (H, 4H)
    b0 = gscale((params["b_ih_l0"] + params["b_hh_l0"]).astype(f32).reshape(1, G))
    w1 = gscale(jnp.concatenate(
        [params["w_ih_l1"].T, params["w_hh_l1"].T], axis=0).astype(f32))     # (2H, 4H)
    b1 = gscale((params["b_ih_l1"] + params["b_hh_l1"]).astype(f32).reshape(1, G))

    fc1w = jnp.zeros((H, G), f32).at[:, :H2].set(params["fc1_w"].T.astype(f32))
    fc1b = jnp.zeros((1, G), f32).at[:, :H2].set(params["fc1_b"].astype(f32))
    fc2w = jnp.zeros((1, G), f32).at[:, :H2].set(params["fc2_w"].reshape(1, H2).astype(f32))
    fc2b = jnp.broadcast_to(params["fc2_b"].astype(f32).reshape(1, 1), (1, G))

    slab = jnp.zeros((SLAB_ROWS, G), f32)
    slab = slab.at[ROW_WIH0:ROW_WIH0 + INPUT_DIM].set(wih0)
    slab = slab.at[ROW_WHH0:ROW_WHH0 + H].set(whh0)
    slab = slab.at[ROW_B0:ROW_B0 + 1].set(b0)
    slab = slab.at[ROW_W1:ROW_W1 + 2 * H].set(w1)
    slab = slab.at[ROW_B1:ROW_B1 + 1].set(b1)
    slab = slab.at[ROW_FC1W:ROW_FC1W + H].set(fc1w)
    slab = slab.at[ROW_FC1B:ROW_FC1B + 1].set(fc1b)
    slab = slab.at[ROW_FC2W:ROW_FC2W + 1].set(fc2w)
    slab = slab.at[ROW_FC2B:ROW_FC2B + 1].set(fc2b)
    return slab


@jax.jit
def lstm_classifier_forward(x, slab):
    """x: (B, T, D) batch-first float32; slab: prepare_params(...). Returns (B, 1)."""
    B, T, D = x.shape
    return pl.pallas_call(
        lstm_classifier_kernel,
        out_shape=jax.ShapeDtypeStruct((B, 1), jnp.float32),
        grid_spec=pltpu.PrefetchScalarGridSpec(
            num_scalar_prefetch=0,
            grid=(1,),
            in_specs=[
                pl.BlockSpec((B, T, D), lambda i: (0, 0, 0)),     # x passed as-is
                pl.BlockSpec(slab.shape, lambda i: (0, 0)),       # packed weight slab
            ],
            out_specs=pl.BlockSpec((B, 1), lambda i: (0, 0)),
        ),
        compiler_params=pltpu.CompilerParams(
            dimension_semantics=("arbitrary",)),
        # NOTE(v7x): grid=(1,) uses a single TensorCore; batching several
        # requests per call (leading "parallel" grid axis) would engage the 2nd TC.
    )(x.astype(jnp.float32), slab)


# -----------------------------------------------------------------------------
# Pure-JAX reference (same math, no Pallas) for a sanity check
# -----------------------------------------------------------------------------
def reference_forward(x, params):
    B, T, D = x.shape
    H = params["w_hh_l0"].shape[1]

    def cell(x_t, h, c, w_ih, w_hh, b):
        gates = x_t @ w_ih.T + h @ w_hh.T + b
        i = jax.nn.sigmoid(gates[:, 0 * H:1 * H])
        f = jax.nn.sigmoid(gates[:, 1 * H:2 * H])
        g = jnp.tanh(gates[:, 2 * H:3 * H])
        o = jax.nn.sigmoid(gates[:, 3 * H:4 * H])
        c = f * c + i * g
        h = o * jnp.tanh(c)
        return h, c

    def run_layer(seq, w_ih, w_hh, b_ih, b_hh):
        b = (b_ih + b_hh)[None, :]
        h = jnp.zeros((B, H), jnp.float32)
        c = jnp.zeros((B, H), jnp.float32)
        outs = []
        for t in range(T):
            h, c = cell(seq[:, t, :], h, c, w_ih, w_hh, b)
            outs.append(h)
        return jnp.stack(outs, axis=1)

    seq = run_layer(x, params["w_ih_l0"], params["w_hh_l0"],
                    params["b_ih_l0"], params["b_hh_l0"])
    seq = run_layer(seq, params["w_ih_l1"], params["w_hh_l1"],
                    params["b_ih_l1"], params["b_hh_l1"])
    h_last = seq[:, -1, :]
    z = jnp.maximum(h_last @ params["fc1_w"].T + params["fc1_b"], 0.0)
    return jax.nn.sigmoid(z @ params["fc2_w"].T + params["fc2_b"])


def init_params(key, input_dim, hidden):
    """Deterministic uniform(-1/sqrt(H), 1/sqrt(H)) init, PyTorch-style."""
    bound = 1.0 / jnp.sqrt(hidden)
    names_shapes = [
        ("w_ih_l0", (4 * hidden, input_dim)),
        ("w_hh_l0", (4 * hidden, hidden)),
        ("b_ih_l0", (4 * hidden,)),
        ("b_hh_l0", (4 * hidden,)),
        ("w_ih_l1", (4 * hidden, hidden)),
        ("w_hh_l1", (4 * hidden, hidden)),
        ("b_ih_l1", (4 * hidden,)),
        ("b_hh_l1", (4 * hidden,)),
        ("fc1_w", (hidden // 2, hidden)),
        ("fc1_b", (hidden // 2,)),
        ("fc2_w", (1, hidden // 2)),
        ("fc2_b", (1,)),
    ]
    params = {}
    keys = jax.random.split(key, len(names_shapes))
    for k, (name, shape) in zip(keys, names_shapes):
        params[name] = jax.random.uniform(
            k, shape, jnp.float32, minval=-bound, maxval=bound)
    return params


if __name__ == "__main__":
    root = jax.random.PRNGKey(0)
    kx, kp = jax.random.split(root)

    x = jax.random.normal(kx, (BATCH, SEQ, INPUT_DIM), jnp.float32)
    params = init_params(kp, INPUT_DIM, HIDDEN)
    slab = prepare_params(params)          # one-time weight re-layout (outside jit)

    out = lstm_classifier_forward(x, slab)
    out = jax.block_until_ready(out)

    ref = reference_forward(x, params)
    assert out.shape == (BATCH, 1)
    assert jnp.allclose(out, ref, atol=1e-3, rtol=1e-3), (out, ref)

    print("KERNEL_OK")
</pallas_src>

<mosaic_0001>
module attributes {stable_mosaic.version = 11 : i64} {
  func.func @lstm_classifier_kernel(%arg0: i32, %arg1: memref<2x8x16xf32, #tpu.memory_space<vmem>>, %arg2: memref<184x128xf32, #tpu.memory_space<vmem>>, %arg3: memref<2x1xf32, #tpu.memory_space<vmem>>) attributes {dimension_semantics = [#tpu.dimension_semantics<arbitrary>], iteration_bounds = array<i64: 1>, scalar_prefetch = 0 : i64, scratch_operands = 0 : i64, tpu.core_type = #tpu.core_type<tc>, window_params = [{pipeline_mode = #tpu.pipeline_mode<synchronous>, transform_indices = @transform_0, window_bounds = array<i64: 2, 8, 16>}, {pipeline_mode = #tpu.pipeline_mode<synchronous>, transform_indices = @transform_1, window_bounds = array<i64: 184, 128>}, {pipeline_mode = #tpu.pipeline_mode<synchronous>, transform_indices = @transform_2, window_bounds = array<i64: 2, 1>}]} {
    %c0 = arith.constant 0 : index
    %c0_0 = arith.constant 0 : index
    %0 = vector.load %arg2[%c0, %c0_0] : memref<184x128xf32, #tpu.memory_space<vmem>>, vector<16x128xf32>
    %c16 = arith.constant 16 : index
    %c0_1 = arith.constant 0 : index
    %1 = vector.load %arg2[%c16, %c0_1] : memref<184x128xf32, #tpu.memory_space<vmem>>, vector<32x128xf32>
    %c48 = arith.constant 48 : index
    %c0_2 = arith.constant 0 : index
    %2 = vector.load %arg2[%c48, %c0_2] : memref<184x128xf32, #tpu.memory_space<vmem>>, vector<1x128xf32>
    %c56 = arith.constant 56 : index
    %c0_3 = arith.constant 0 : index
    %3 = vector.load %arg2[%c56, %c0_3] : memref<184x128xf32, #tpu.memory_space<vmem>>, vector<64x128xf32>
    %c120 = arith.constant 120 : index
    %c0_4 = arith.constant 0 : index
    %4 = vector.load %arg2[%c120, %c0_4] : memref<184x128xf32, #tpu.memory_space<vmem>>, vector<1x128xf32>
    %c0_5 = arith.constant 0 : index
    %c0_6 = arith.constant 0 : index
    %c0_7 = arith.constant 0 : index
    %5 = vector.load %arg1[%c0_5, %c0_6, %c0_7] : memref<2x8x16xf32, #tpu.memory_space<vmem>>, vector<2x8x16xf32>
    %6 = vector.shape_cast %5 : vector<2x8x16xf32> to vector<16x16xf32>
    %cst = arith.constant dense<0.000000e+00> : vector<16x128xf32>
    %7 = tpu.matmul %6, %0, %cst {dimension_numbers = #tpu.dot_dimension_numbers<[1], [0], [0], [1], [0, 0, 1, 1], [], []>} : vector<16x16xf32>, vector<16x128xf32>, vector<16x128xf32> -> vector<16x128xf32>
    %8 = vector.broadcast %2 : vector<1x128xf32> to vector<16x128xf32>
    %9 = arith.addf %7, %8 : vector<16x128xf32>
    %10 = vector.shape_cast %9 : vector<16x128xf32> to vector<2x8x128xf32>
    %cst_8 = arith.constant 0.000000e+00 : f32
    %11 = vector.broadcast %cst_8 : f32 to vector<2x32xf32>
    %12 = vector.extract_strided_slice %10 {offsets = [0, 0, 0], sizes = [2, 1, 128], strides = [1, 1, 1]} : vector<2x8x128xf32> to vector<2x1x128xf32>
    %13 = vector.shape_cast %12 : vector<2x1x128xf32> to vector<2x128xf32>
    %14 = arith.negf %13 : vector<2x128xf32>
    %15 = math.exp %14 : vector<2x128xf32>
    %cst_9 = arith.constant 1.000000e+00 : f32
    %16 = vector.broadcast %cst_9 : f32 to vector<2x128xf32>
    %17 = arith.addf %16, %15 : vector<2x128xf32>
    %18 = arith.divf %16, %17 : vector<2x128xf32>
    %19 = vector.extract_strided_slice %18 {offsets = [0, 0], sizes = [2, 32], strides = [1, 1]} : vector<2x128xf32> to vector<2x32xf32>
    %20 = vector.extract_strided_slice %18 {offsets = [0, 32], sizes = [2, 32], strides = [1, 1]} : vector<2x128xf32> to vector<2x32xf32>
    %21 = vector.extract_strided_slice %18 {offsets = [0, 64], sizes = [2, 32], strides = [1, 1]} : vector<2x128xf32> to vector<2x32xf32>
    %cst_10 = arith.constant 2.000000e+00 : f32
    %22 = vector.broadcast %cst_10 : f32 to vector<2x32xf32>
    %23 = arith.mulf %22, %21 : vector<2x32xf32>
    %cst_11 = arith.constant 1.000000e+00 : f32
    %24 = vector.broadcast %cst_11 : f32 to vector<2x32xf32>
    %25 = arith.subf %23, %24 : vector<2x32xf32>
    %26 = vector.extract_strided_slice %18 {offsets = [0, 96], sizes = [2, 32], strides = [1, 1]} : vector<2x128xf32> to vector<2x32xf32>
    %27 = arith.mulf %20, %11 : vector<2x32xf32>
    %28 = arith.mulf %19, %25 : vector<2x32xf32>
    %29 = arith.addf %27, %28 : vector<2x32xf32>
    %30 = math.tanh %29 : vector<2x32xf32>
    %31 = arith.mulf %26, %30 : vector<2x32xf32>
    %32 = tpu.concatenate %31, %11 in 1 : vector<2x32xf32>, vector<2x32xf32> -> vector<2x64xf32>
    %cst_12 = arith.constant dense<0.000000e+00> : vector<2x128xf32>
    %33 = tpu.matmul %32, %3, %cst_12 {dimension_numbers = #tpu.dot_dimension_numbers<[1], [0], [0], [1], [0, 0, 1, 1], [], []>} : vector<2x64xf32>, vector<64x128xf32>, vector<2x128xf32> -> vector<2x128xf32>
    %34 = vector.broadcast %4 : vector<1x128xf32> to vector<2x128xf32>
    %35 = arith.addf %33, %34 : vector<2x128xf32>
    %36 = arith.negf %35 : vector<2x128xf32>
    %37 = math.exp %36 : vector<2x128xf32>
    %cst_13 = arith.constant 1.000000e+00 : f32
    %38 = vector.broadcast %cst_13 : f32 to vector<2x128xf32>
    %39 = arith.addf %38, %37 : vector<2x128xf32>
    %40 = arith.divf %38, %39 : vector<2x128xf32>
    %41 = vector.extract_strided_slice %40 {offsets = [0, 0], sizes = [2, 32], strides = [1, 1]} : vector<2x128xf32> to vector<2x32xf32>
    %42 = vector.extract_strided_slice %40 {offsets = [0, 32], sizes = [2, 32], strides = [1, 1]} : vector<2x128xf32> to vector<2x32xf32>
    %43 = vector.extract_strided_slice %40 {offsets = [0, 64], sizes = [2, 32], strides = [1, 1]} : vector<2x128xf32> to vector<2x32xf32>
    %cst_14 = arith.constant 2.000000e+00 : f32
    %44 = vector.broadcast %cst_14 : f32 to vector<2x32xf32>
    %45 = arith.mulf %44, %43 : vector<2x32xf32>
    %cst_15 = arith.constant 1.000000e+00 : f32
    %46 = vector.broadcast %cst_15 : f32 to vector<2x32xf32>
    %47 = arith.subf %45, %46 : vector<2x32xf32>
    %48 = vector.extract_strided_slice %40 {offsets = [0, 96], sizes = [2, 32], strides = [1, 1]} : vector<2x128xf32> to vector<2x32xf32>
    %49 = arith.mulf %42, %11 : vector<2x32xf32>
    %50 = arith.mulf %41, %47 : vector<2x32xf32>
    %51 = arith.addf %49, %50 : vector<2x32xf32>
    %52 = math.tanh %51 : vector<2x32xf32>
    %53 = arith.mulf %48, %52 : vector<2x32xf32>
    %54 = vector.extract_strided_slice %10 {offsets = [0, 1, 0], sizes = [2, 1, 128], strides = [1, 1, 1]} : vector<2x8x128xf32> to vector<2x1x128xf32>
    %55 = vector.shape_cast %54 : vector<2x1x128xf32> to vector<2x128xf32>
    %cst_16 = arith.constant dense<0.000000e+00> : vector<2x128xf32>
    %56 = tpu.matmul %31, %1, %cst_16 {dimension_numbers = #tpu.dot_dimension_numbers<[1], [0], [0], [1], [0, 0, 1, 1], [], []>} : vector<2x32xf32>, vector<32x128xf32>, vector<2x128xf32> -> vector<2x128xf32>
    %57 = arith.addf %55, %56 : vector<2x128xf32>
    %58 = arith.negf %57 : vector<2x128xf32>
    %59 = math.exp %58 : vector<2x128xf32>
    %cst_17 = arith.constant 1.000000e+00 : f32
    %60 = vector.broadcast %cst_17 : f32 to vector<2x128xf32>
    %61 = arith.addf %60, %59 : vector<2x128xf32>
    %62 = arith.divf %60, %61 : vector<2x128xf32>
    %63 = vector.extract_strided_slice %62 {offsets = [0, 0], sizes = [2, 32], strides = [1, 1]} : vector<2x128xf32> to vector<2x32xf32>
    %64 = vector.extract_strided_slice %62 {offsets = [0, 32], sizes = [2, 32], strides = [1, 1]} : vector<2x128xf32> to vector<2x32xf32>
    %65 = vector.extract_strided_slice %62 {offsets = [0, 64], sizes = [2, 32], strides = [1, 1]} : vector<2x128xf32> to vector<2x32xf32>
    %cst_18 = arith.constant 2.000000e+00 : f32
    %66 = vector.broadcast %cst_18 : f32 to vector<2x32xf32>
    %67 = arith.mulf %66, %65 : vector<2x32xf32>
    %cst_19 = arith.constant 1.000000e+00 : f32
    %68 = vector.broadcast %cst_19 : f32 to vector<2x32xf32>
    %69 = arith.subf %67, %68 : vector<2x32xf32>
    %70 = vector.extract_strided_slice %62 {offsets = [0, 96], sizes = [2, 32], strides = [1, 1]} : vector<2x128xf32> to vector<2x32xf32>
    %71 = arith.mulf %64, %29 : vector<2x32xf32>
    %72 = arith.mulf %63, %69 : vector<2x32xf32>
    %73 = arith.addf %71, %72 : vector<2x32xf32>
    %74 = math.tanh %73 : vector<2x32xf32>
    %75 = arith.mulf %70, %74 : vector<2x32xf32>
    %76 = tpu.concatenate %75, %53 in 1 : vector<2x32xf32>, vector<2x32xf32> -> vector<2x64xf32>
    %cst_20 = arith.constant dense<0.000000e+00> : vector<2x128xf32>
    %77 = tpu.matmul %76, %3, %cst_20 {dimension_numbers = #tpu.dot_dimension_numbers<[1], [0], [0], [1], [0, 0, 1, 1], [], []>} : vector<2x64xf32>, vector<64x128xf32>, vector<2x128xf32> -> vector<2x128xf32>
    %78 = vector.broadcast %4 : vector<1x128xf32> to vector<2x128xf32>
    %79 = arith.addf %77, %78 : vector<2x128xf32>
    %80 = arith.negf %79 : vector<2x128xf32>
    %81 = math.exp %80 : vector<2x128xf32>
    %cst_21 = arith.constant 1.000000e+00 : f32
    %82 = vector.broadcast %cst_21 : f32 to vector<2x128xf32>
    %83 = arith.addf %82, %81 : vector<2x128xf32>
    %84 = arith.divf %82, %83 : vector<2x128xf32>
    %85 = vector.extract_strided_slice %84 {offsets = [0, 0], sizes = [2, 32], strides = [1, 1]} : vector<2x128xf32> to vector<2x32xf32>
    %86 = vector.extract_strided_slice %84 {offsets = [0, 32], sizes = [2, 32], strides = [1, 1]} : vector<2x128xf32> to vector<2x32xf32>
    %87 = vector.extract_strided_slice %84 {offsets = [0, 64], sizes = [2, 32], strides = [1, 1]} : vector<2x128xf32> to vector<2x32xf32>
    %cst_22 = arith.constant 2.000000e+00 : f32
    %88 = vector.broadcast %cst_22 : f32 to vector<2x32xf32>
    %89 = arith.mulf %88, %87 : vector<2x32xf32>
    %cst_23 = arith.constant 1.000000e+00 : f32
    %90 = vector.broadcast %cst_23 : f32 to vector<2x32xf32>
    %91 = arith.subf %89, %90 : vector<2x32xf32>
    %92 = vector.extract_strided_slice %84 {offsets = [0, 96], sizes = [2, 32], strides = [1, 1]} : vector<2x128xf32> to vector<2x32xf32>
    %93 = arith.mulf %86, %51 : vector<2x32xf32>
    %94 = arith.mulf %85, %91 : vector<2x32xf32>
    %95 = arith.addf %93, %94 : vector<2x32xf32>
    %96 = math.tanh %95 : vector<2x32xf32>
    %97 = arith.mulf %92, %96 : vector<2x32xf32>
    %98 = vector.extract_strided_slice %10 {offsets = [0, 2, 0], sizes = [2, 1, 128], strides = [1, 1, 1]} : vector<2x8x128xf32> to vector<2x1x128xf32>
    %99 = vector.shape_cast %98 : vector<2x1x128xf32> to vector<2x128xf32>
    %cst_24 = arith.constant dense<0.000000e+00> : vector<2x128xf32>
    %100 = tpu.matmul %75, %1, %cst_24 {dimension_numbers = #tpu.dot_dimension_numbers<[1], [0], [0], [1], [0, 0, 1, 1], [], []>} : vector<2x32xf32>, vector<32x128xf32>, vector<2x128xf32> -> vector<2x128xf32>
    %101 = arith.addf %99, %100 : vector<2x128xf32>
    %102 = arith.negf %101 : vector<2x128xf32>
    %103 = math.exp %102 : vector<2x128xf32>
    %cst_25 = arith.constant 1.000000e+00 : f32
    %104 = vector.broadcast %cst_25 : f32 to vector<2x128xf32>
    %105 = arith.addf %104, %103 : vector<2x128xf32>
    %106 = arith.divf %104, %105 : vector<2x128xf32>
    %107 = vector.extract_strided_slice %106 {offsets = [0, 0], sizes = [2, 32], strides = [1, 1]} : vector<2x128xf32> to vector<2x32xf32>
    %108 = vector.extract_strided_slice %106 {offsets = [0, 32], sizes = [2, 32], strides = [1, 1]} : vector<2x128xf32> to vector<2x32xf32>
    %109 = vector.extract_strided_slice %106 {offsets = [0, 64], sizes = [2, 32], strides = [1, 1]} : vector<2x128xf32> to vector<2x32xf32>
    %cst_26 = arith.constant 2.000000e+00 : f32
    %110 = vector.broadcast %cst_26 : f32 to vector<2x32xf32>
    %111 = arith.mulf %110, %109 : vector<2x32xf32>
    %cst_27 = arith.constant 1.000000e+00 : f32
    %112 = vector.broadcast %cst_27 : f32 to vector<2x32xf32>
    %113 = arith.subf %111, %112 : vector<2x32xf32>
    %114 = vector.extract_strided_slice %106 {offsets = [0, 96], sizes = [2, 32], strides = [1, 1]} : vector<2x128xf32> to vector<2x32xf32>
    %115 = arith.mulf %108, %73 : vector<2x32xf32>
    %116 = arith.mulf %107, %113 : vector<2x32xf32>
    %117 = arith.addf %115, %116 : vector<2x32xf32>
    %118 = math.tanh %117 : vector<2x32xf32>
    %119 = arith.mulf %114, %118 : vector<2x32xf32>
    %120 = tpu.concatenate %119, %97 in 1 : vector<2x32xf32>, vector<2x32xf32> -> vector<2x64xf32>
    %cst_28 = arith.constant dense<0.000000e+00> : vector<2x128xf32>
    %121 = tpu.matmul %120, %3, %cst_28 {dimension_numbers = #tpu.dot_dimension_numbers<[1], [0], [0], [1], [0, 0, 1, 1], [], []>} : vector<2x64xf32>, vector<64x128xf32>, vector<2x128xf32> -> vector<2x128xf32>
    %122 = vector.broadcast %4 : vector<1x128xf32> to vector<2x128xf32>
    %123 = arith.addf %121, %122 : vector<2x128xf32>
    %124 = arith.negf %123 : vector<2x128xf32>
    %125 = math.exp %124 : vector<2x128xf32>
    %cst_29 = arith.constant 1.000000e+00 : f32
    %126 = vector.broadcast %cst_29 : f32 to vector<2x128xf32>
    %127 = arith.addf %126, %125 : vector<2x128xf32>
    %128 = arith.divf %126, %127 : vector<2x128xf32>
    %129 = vector.extract_strided_slice %128 {offsets = [0, 0], sizes = [2, 32], strides = [1, 1]} : vector<2x128xf32> to vector<2x32xf32>
    %130 = vector.extract_strided_slice %128 {offsets = [0, 32], sizes = [2, 32], strides = [1, 1]} : vector<2x128xf32> to vector<2x32xf32>
    %131 = vector.extract_strided_slice %128 {offsets = [0, 64], sizes = [2, 32], strides = [1, 1]} : vector<2x128xf32> to vector<2x32xf32>
    %cst_30 = arith.constant 2.000000e+00 : f32
    %132 = vector.broadcast %cst_30 : f32 to vector<2x32xf32>
    %133 = arith.mulf %132, %131 : vector<2x32xf32>
    %cst_31 = arith.constant 1.000000e+00 : f32
    %134 = vector.broadcast %cst_31 : f32 to vector<2x32xf32>
    %135 = arith.subf %133, %134 : vector<2x32xf32>
    %136 = vector.extract_strided_slice %128 {offsets = [0, 96], sizes = [2, 32], strides = [1, 1]} : vector<2x128xf32> to vector<2x32xf32>
    %137 = arith.mulf %130, %95 : vector<2x32xf32>
    %138 = arith.mulf %129, %135 : vector<2x32xf32>
    %139 = arith.addf %137, %138 : vector<2x32xf32>
    %140 = math.tanh %139 : vector<2x32xf32>
    %141 = arith.mulf %136, %140 : vector<2x32xf32>
    %142 = vector.extract_strided_slice %10 {offsets = [0, 3, 0], sizes = [2, 1, 128], strides = [1, 1, 1]} : vector<2x8x128xf32> to vector<2x1x128xf32>
    %143 = vector.shape_cast %142 : vector<2x1x128xf32> to vector<2x128xf32>
    %cst_32 = arith.constant dense<0.000000e+00> : vector<2x128xf32>
    %144 = tpu.matmul %119, %1, %cst_32 {dimension_numbers = #tpu.dot_dimension_numbers<[1], [0], [0], [1], [0, 0, 1, 1], [], []>} : vector<2x32xf32>, vector<32x128xf32>, vector<2x128xf32> -> vector<2x128xf32>
    %145 = arith.addf %143, %144 : vector<2x128xf32>
    %146 = arith.negf %145 : vector<2x128xf32>
    %147 = math.exp %146 : vector<2x128xf32>
    %cst_33 = arith.constant 1.000000e+00 : f32
    %148 = vector.broadcast %cst_33 : f32 to vector<2x128xf32>
    %149 = arith.addf %148, %147 : vector<2x128xf32>
    %150 = arith.divf %148, %149 : vector<2x128xf32>
    %151 = vector.extract_strided_slice %150 {offsets = [0, 0], sizes = [2, 32], strides = [1, 1]} : vector<2x128xf32> to vector<2x32xf32>
    %152 = vector.extract_strided_slice %150 {offsets = [0, 32], sizes = [2, 32], strides = [1, 1]} : vector<2x128xf32> to vector<2x32xf32>
    %153 = vector.extract_strided_slice %150 {offsets = [0, 64], sizes = [2, 32], strides = [1, 1]} : vector<2x128xf32> to vector<2x32xf32>
    %cst_34 = arith.constant 2.000000e+00 : f32
    %154 = vector.broadcast %cst_34 : f32 to vector<2x32xf32>
    %155 = arith.mulf %154, %153 : vector<2x32xf32>
    %cst_35 = arith.constant 1.000000e+00 : f32
    %156 = vector.broadcast %cst_35 : f32 to vector<2x32xf32>
    %157 = arith.subf %155, %156 : vector<2x32xf32>
    %158 = vector.extract_strided_slice %150 {offsets = [0, 96], sizes = [2, 32], strides = [1, 1]} : vector<2x128xf32> to vector<2x32xf32>
    %159 = arith.mulf %152, %117 : vector<2x32xf32>
    %160 = arith.mulf %151, %157 : vector<2x32xf32>
    %161 = arith.addf %159, %160 : vector<2x32xf32>
    %162 = math.tanh %161 : vector<2x32xf32>
    %163 = arith.mulf %158, %162 : vector<2x32xf32>
    %164 = tpu.concatenate %163, %141 in 1 : vector<2x32xf32>, vector<2x32xf32> -> vector<2x64xf32>
    %cst_36 = arith.constant dense<0.000000e+00> : vector<2x128xf32>
    %165 = tpu.matmul %164, %3, %cst_36 {dimension_numbers = #tpu.dot_dimension_numbers<[1], [0], [0], [1], [0, 0, 1, 1], [], []>} : vector<2x64xf32>, vector<64x128xf32>, vector<2x128xf32> -> vector<2x128xf32>
    %166 = vector.broadcast %4 : vector<1x128xf32> to vector<2x128xf32>
    %167 = arith.addf %165, %166 : vector<2x128xf32>
    %168 = arith.negf %167 : vector<2x128xf32>
    %169 = math.exp %168 : vector<2x128xf32>
    %cst_37 = arith.constant 1.000000e+00 : f32
    %170 = vector.broadcast %cst_37 : f32 to vector<2x128xf32>
    %171 = arith.addf %170, %169 : vector<2x128xf32>
    %172 = arith.divf %170, %171 : vector<2x128xf32>
    %173 = vector.extract_strided_slice %172 {offsets = [0, 0], sizes = [2, 32], strides = [1, 1]} : vector<2x128xf32> to vector<2x32xf32>
    %174 = vector.extract_strided_slice %172 {offsets = [0, 32], sizes = [2, 32], strides = [1, 1]} : vector<2x128xf32> to vector<2x32xf32>
    %175 = vector.extract_strided_slice %172 {offsets = [0, 64], sizes = [2, 32], strides = [1, 1]} : vector<2x128xf32> to vector<2x32xf32>
    %cst_38 = arith.constant 2.000000e+00 : f32
    %176 = vector.broadcast %cst_38 : f32 to vector<2x32xf32>
    %177 = arith.mulf %176, %175 : vector<2x32xf32>
    %cst_39 = arith.constant 1.000000e+00 : f32
    %178 = vector.broadcast %cst_39 : f32 to vector<2x32xf32>
    %179 = arith.subf %177, %178 : vector<2x32xf32>
    %180 = vector.extract_strided_slice %172 {offsets = [0, 96], sizes = [2, 32], strides = [1, 1]} : vector<2x128xf32> to vector<2x32xf32>
    %181 = arith.mulf %174, %139 : vector<2x32xf32>
    %182 = arith.mulf %173, %179 : vector<2x32xf32>
    %183 = arith.addf %181, %182 : vector<2x32xf32>
    %184 = math.tanh %183 : vector<2x32xf32>
    %185 = arith.mulf %180, %184 : vector<2x32xf32>
    %186 = vector.extract_strided_slice %10 {offsets = [0, 4, 0], sizes = [2, 1, 128], strides = [1, 1, 1]} : vector<2x8x128xf32> to vector<2x1x128xf32>
    %187 = vector.shape_cast %186 : vector<2x1x128xf32> to vector<2x128xf32>
    %cst_40 = arith.constant dense<0.000000e+00> : vector<2x128xf32>
    %188 = tpu.matmul %163, %1, %cst_40 {dimension_numbers = #tpu.dot_dimension_numbers<[1], [0], [0], [1], [0, 0, 1, 1], [], []>} : vector<2x32xf32>, vector<32x128xf32>, vector<2x128xf32> -> vector<2x128xf32>
    %189 = arith.addf %187, %188 : vector<2x128xf32>
    %190 = arith.negf %189 : vector<2x128xf32>
    %191 = math.exp %190 : vector<2x128xf32>
    %cst_41 = arith.constant 1.000000e+00 : f32
    %192 = vector.broadcast %cst_41 : f32 to vector<2x128xf32>
    %193 = arith.addf %192, %191 : vector<2x128xf32>
    %194 = arith.divf %192, %193 : vector<2x128xf32>
    %195 = vector.extract_strided_slice %194 {offsets = [0, 0], sizes = [2, 32], strides = [1, 1]} : vector<2x128xf32> to vector<2x32xf32>
    %196 = vector.extract_strided_slice %194 {offsets = [0, 32], sizes = [2, 32], strides = [1, 1]} : vector<2x128xf32> to vector<2x32xf32>
    %197 = vector.extract_strided_slice %194 {offsets = [0, 64], sizes = [2, 32], strides = [1, 1]} : vector<2x128xf32> to vector<2x32xf32>
    %cst_42 = arith.constant 2.000000e+00 : f32
    %198 = vector.broadcast %cst_42 : f32 to vector<2x32xf32>
    %199 = arith.mulf %198, %197 : vector<2x32xf32>
    %cst_43 = arith.constant 1.000000e+00 : f32
    %200 = vector.broadcast %cst_43 : f32 to vector<2x32xf32>
    %201 = arith.subf %199, %200 : vector<2x32xf32>
    %202 = vector.extract_strided_slice %194 {offsets = [0, 96], sizes = [2, 32], strides = [1, 1]} : vector<2x128xf32> to vector<2x32xf32>
    %203 = arith.mulf %196, %161 : vector<2x32xf32>
    %204 = arith.mulf %195, %201 : vector<2x32xf32>
    %205 = arith.addf %203, %204 : vector<2x32xf32>
    %206 = math.tanh %205 : vector<2x32xf32>
    %207 = arith.mulf %202, %206 : vector<2x32xf32>
    %208 = tpu.concatenate %207, %185 in 1 : vector<2x32xf32>, vector<2x32xf32> -> vector<2x64xf32>
    %cst_44 = arith.constant dense<0.000000e+00> : vector<2x128xf32>
    %209 = tpu.matmul %208, %3, %cst_44 {dimension_numbers = #tpu.dot_dimension_numbers<[1], [0], [0], [1], [0, 0, 1, 1], [], []>} : vector<2x64xf32>, vector<64x128xf32>, vector<2x128xf32> -> vector<2x128xf32>
    %210 = vector.broadcast %4 : vector<1x128xf32> to vector<2x128xf32>
    %211 = arith.addf %209, %210 : vector<2x128xf32>
    %212 = arith.negf %211 : vector<2x128xf32>
    %213 = math.exp %212 : vector<2x128xf32>
    %cst_45 = arith.constant 1.000000e+00 : f32
    %214 = vector.broadcast %cst_45 : f32 to vector<2x128xf32>
    %215 = arith.addf %214, %213 : vector<2x128xf32>
    %216 = arith.divf %214, %215 : vector<2x128xf32>
    %217 = vector.extract_strided_slice %216 {offsets = [0, 0], sizes = [2, 32], strides = [1, 1]} : vector<2x128xf32> to vector<2x32xf32>
    %218 = vector.extract_strided_slice %216 {offsets = [0, 32], sizes = [2, 32], strides = [1, 1]} : vector<2x128xf32> to vector<2x32xf32>
    %219 = vector.extract_strided_slice %216 {offsets = [0, 64], sizes = [2, 32], strides = [1, 1]} : vector<2x128xf32> to vector<2x32xf32>
    %cst_46 = arith.constant 2.000000e+00 : f32
    %220 = vector.broadcast %cst_46 : f32 to vector<2x32xf32>
    %221 = arith.mulf %220, %219 : vector<2x32xf32>
    %cst_47 = arith.constant 1.000000e+00 : f32
    %222 = vector.broadcast %cst_47 : f32 to vector<2x32xf32>
    %223 = arith.subf %221, %222 : vector<2x32xf32>
    %224 = vector.extract_strided_slice %216 {offsets = [0, 96], sizes = [2, 32], strides = [1, 1]} : vector<2x128xf32> to vector<2x32xf32>
    %225 = arith.mulf %218, %183 : vector<2x32xf32>
    %226 = arith.mulf %217, %223 : vector<2x32xf32>
    %227 = arith.addf %225, %226 : vector<2x32xf32>
    %228 = math.tanh %227 : vector<2x32xf32>
    %229 = arith.mulf %224, %228 : vector<2x32xf32>
    %230 = vector.extract_strided_slice %10 {offsets = [0, 5, 0], sizes = [2, 1, 128], strides = [1, 1, 1]} : vector<2x8x128xf32> to vector<2x1x128xf32>
    %231 = vector.shape_cast %230 : vector<2x1x128xf32> to vector<2x128xf32>
    %cst_48 = arith.constant dense<0.000000e+00> : vector<2x128xf32>
    %232 = tpu.matmul %207, %1, %cst_48 {dimension_numbers = #tpu.dot_dimension_numbers<[1], [0], [0], [1], [0, 0, 1, 1], [], []>} : vector<2x32xf32>, vector<32x128xf32>, vector<2x128xf32> -> vector<2x128xf32>
    %233 = arith.addf %231, %232 : vector<2x128xf32>
    %234 = arith.negf %233 : vector<2x128xf32>
    %235 = math.exp %234 : vector<2x128xf32>
    %cst_49 = arith.constant 1.000000e+00 : f32
    %236 = vector.broadcast %cst_49 : f32 to vector<2x128xf32>
    %237 = arith.addf %236, %235 : vector<2x128xf32>
    %238 = arith.divf %236, %237 : vector<2x128xf32>
    %239 = vector.extract_strided_slice %238 {offsets = [0, 0], sizes = [2, 32], strides = [1, 1]} : vector<2x128xf32> to vector<2x32xf32>
    %240 = vector.extract_strided_slice %238 {offsets = [0, 32], sizes = [2, 32], strides = [1, 1]} : vector<2x128xf32> to vector<2x32xf32>
    %241 = vector.extract_strided_slice %238 {offsets = [0, 64], sizes = [2, 32], strides = [1, 1]} : vector<2x128xf32> to vector<2x32xf32>
    %cst_50 = arith.constant 2.000000e+00 : f32
    %242 = vector.broadcast %cst_50 : f32 to vector<2x32xf32>
    %243 = arith.mulf %242, %241 : vector<2x32xf32>
    %cst_51 = arith.constant 1.000000e+00 : f32
    %244 = vector.broadcast %cst_51 : f32 to vector<2x32xf32>
    %245 = arith.subf %243, %244 : vector<2x32xf32>
    %246 = vector.extract_strided_slice %238 {offsets = [0, 96], sizes = [2, 32], strides = [1, 1]} : vector<2x128xf32> to vector<2x32xf32>
    %247 = arith.mulf %240, %205 : vector<2x32xf32>
    %248 = arith.mulf %239, %245 : vector<2x32xf32>
    %249 = arith.addf %247, %248 : vector<2x32xf32>
    %250 = math.tanh %249 : vector<2x32xf32>
    %251 = arith.mulf %246, %250 : vector<2x32xf32>
    %252 = tpu.concatenate %251, %229 in 1 : vector<2x32xf32>, vector<2x32xf32> -> vector<2x64xf32>
    %cst_52 = arith.constant dense<0.000000e+00> : vector<2x128xf32>
    %253 = tpu.matmul %252, %3, %cst_52 {dimension_numbers = #tpu.dot_dimension_numbers<[1], [0], [0], [1], [0, 0, 1, 1], [], []>} : vector<2x64xf32>, vector<64x128xf32>, vector<2x128xf32> -> vector<2x128xf32>
    %254 = vector.broadcast %4 : vector<1x128xf32> to vector<2x128xf32>
    %255 = arith.addf %253, %254 : vector<2x128xf32>
    %256 = arith.negf %255 : vector<2x128xf32>
    %257 = math.exp %256 : vector<2x128xf32>
    %cst_53 = arith.constant 1.000000e+00 : f32
    %258 = vector.broadcast %cst_53 : f32 to vector<2x128xf32>
    %259 = arith.addf %258, %257 : vector<2x128xf32>
    %260 = arith.divf %258, %259 : vector<2x128xf32>
    %261 = vector.extract_strided_slice %260 {offsets = [0, 0], sizes = [2, 32], strides = [1, 1]} : vector<2x128xf32> to vector<2x32xf32>
    %262 = vector.extract_strided_slice %260 {offsets = [0, 32], sizes = [2, 32], strides = [1, 1]} : vector<2x128xf32> to vector<2x32xf32>
    %263 = vector.extract_strided_slice %260 {offsets = [0, 64], sizes = [2, 32], strides = [1, 1]} : vector<2x128xf32> to vector<2x32xf32>
    %cst_54 = arith.constant 2.000000e+00 : f32
    %264 = vector.broadcast %cst_54 : f32 to vector<2x32xf32>
    %265 = arith.mulf %264, %263 : vector<2x32xf32>
    %cst_55 = arith.constant 1.000000e+00 : f32
    %266 = vector.broadcast %cst_55 : f32 to vector<2x32xf32>
    %267 = arith.subf %265, %266 : vector<2x32xf32>
    %268 = vector.extract_strided_slice %260 {offsets = [0, 96], sizes = [2, 32], strides = [1, 1]} : vector<2x128xf32> to vector<2x32xf32>
    %269 = arith.mulf %262, %227 : vector<2x32xf32>
    %270 = arith.mulf %261, %267 : vector<2x32xf32>
    %271 = arith.addf %269, %270 : vector<2x32xf32>
    %272 = math.tanh %271 : vector<2x32xf32>
    %273 = arith.mulf %268, %272 : vector<2x32xf32>
    %274 = vector.extract_strided_slice %10 {offsets = [0, 6, 0], sizes = [2, 1, 128], strides = [1, 1, 1]} : vector<2x8x128xf32> to vector<2x1x128xf32>
    %275 = vector.shape_cast %274 : vector<2x1x128xf32> to vector<2x128xf32>
    %cst_56 = arith.constant dense<0.000000e+00> : vector<2x128xf32>
    %276 = tpu.matmul %251, %1, %cst_56 {dimension_numbers = #tpu.dot_dimension_numbers<[1], [0], [0], [1], [0, 0, 1, 1], [], []>} : vector<2x32xf32>, vector<32x128xf32>, vector<2x128xf32> -> vector<2x128xf32>
    %277 = arith.addf %275, %276 : vector<2x128xf32>
    %278 = arith.negf %277 : vector<2x128xf32>
    %279 = math.exp %278 : vector<2x128xf32>
    %cst_57 = arith.constant 1.000000e+00 : f32
    %280 = vector.broadcast %cst_57 : f32 to vector<2x128xf32>
    %281 = arith.addf %280, %279 : vector<2x128xf32>
    %282 = arith.divf %280, %281 : vector<2x128xf32>
    %283 = vector.extract_strided_slice %282 {offsets = [0, 0], sizes = [2, 32], strides = [1, 1]} : vector<2x128xf32> to vector<2x32xf32>
    %284 = vector.extract_strided_slice %282 {offsets = [0, 32], sizes = [2, 32], strides = [1, 1]} : vector<2x128xf32> to vector<2x32xf32>
    %285 = vector.extract_strided_slice %282 {offsets = [0, 64], sizes = [2, 32], strides = [1, 1]} : vector<2x128xf32> to vector<2x32xf32>
    %cst_58 = arith.constant 2.000000e+00 : f32
    %286 = vector.broadcast %cst_58 : f32 to vector<2x32xf32>
    %287 = arith.mulf %286, %285 : vector<2x32xf32>
    %cst_59 = arith.constant 1.000000e+00 : f32
    %288 = vector.broadcast %cst_59 : f32 to vector<2x32xf32>
    %289 = arith.subf %287, %288 : vector<2x32xf32>
    %290 = vector.extract_strided_slice %282 {offsets = [0, 96], sizes = [2, 32], strides = [1, 1]} : vector<2x128xf32> to vector<2x32xf32>
    %291 = arith.mulf %284, %249 : vector<2x32xf32>
    %292 = arith.mulf %283, %289 : vector<2x32xf32>
    %293 = arith.addf %291, %292 : vector<2x32xf32>
    %294 = math.tanh %293 : vector<2x32xf32>
    %295 = arith.mulf %290, %294 : vector<2x32xf32>
    %296 = tpu.concatenate %295, %273 in 1 : vector<2x32xf32>, vector<2x32xf32> -> vector<2x64xf32>
    %cst_60 = arith.constant dense<0.000000e+00> : vector<2x128xf32>
    %297 = tpu.matmul %296, %3, %cst_60 {dimension_numbers = #tpu.dot_dimension_numbers<[1], [0], [0], [1], [0, 0, 1, 1], [], []>} : vector<2x64xf32>, vector<64x128xf32>, vector<2x128xf32> -> vector<2x128xf32>
    %298 = vector.broadcast %4 : vector<1x128xf32> to vector<2x128xf32>
    %299 = arith.addf %297, %298 : vector<2x128xf32>
    %300 = arith.negf %299 : vector<2x128xf32>
    %301 = math.exp %300 : vector<2x128xf32>
    %cst_61 = arith.constant 1.000000e+00 : f32
    %302 = vector.broadcast %cst_61 : f32 to vector<2x128xf32>
    %303 = arith.addf %302, %301 : vector<2x128xf32>
    %304 = arith.divf %302, %303 : vector<2x128xf32>
    %305 = vector.extract_strided_slice %304 {offsets = [0, 0], sizes = [2, 32], strides = [1, 1]} : vector<2x128xf32> to vector<2x32xf32>
    %306 = vector.extract_strided_slice %304 {offsets = [0, 32], sizes = [2, 32], strides = [1, 1]} : vector<2x128xf32> to vector<2x32xf32>
    %307 = vector.extract_strided_slice %304 {offsets = [0, 64], sizes = [2, 32], strides = [1, 1]} : vector<2x128xf32> to vector<2x32xf32>
    %cst_62 = arith.constant 2.000000e+00 : f32
    %308 = vector.broadcast %cst_62 : f32 to vector<2x32xf32>
    %309 = arith.mulf %308, %307 : vector<2x32xf32>
    %cst_63 = arith.constant 1.000000e+00 : f32
    %310 = vector.broadcast %cst_63 : f32 to vector<2x32xf32>
    %311 = arith.subf %309, %310 : vector<2x32xf32>
    %312 = vector.extract_strided_slice %304 {offsets = [0, 96], sizes = [2, 32], strides = [1, 1]} : vector<2x128xf32> to vector<2x32xf32>
    %313 = arith.mulf %306, %271 : vector<2x32xf32>
    %314 = arith.mulf %305, %311 : vector<2x32xf32>
    %315 = arith.addf %313, %314 : vector<2x32xf32>
    %316 = math.tanh %315 : vector<2x32xf32>
    %317 = arith.mulf %312, %316 : vector<2x32xf32>
    %318 = vector.extract_strided_slice %10 {offsets = [0, 7, 0], sizes = [2, 1, 128], strides = [1, 1, 1]} : vector<2x8x128xf32> to vector<2x1x128xf32>
    %319 = vector.shape_cast %318 : vector<2x1x128xf32> to vector<2x128xf32>
    %cst_64 = arith.constant dense<0.000000e+00> : vector<2x128xf32>
    %320 = tpu.matmul %295, %1, %cst_64 {dimension_numbers = #tpu.dot_dimension_numbers<[1], [0], [0], [1], [0, 0, 1, 1], [], []>} : vector<2x32xf32>, vector<32x128xf32>, vector<2x128xf32> -> vector<2x128xf32>
    %321 = arith.addf %319, %320 : vector<2x128xf32>
    %322 = arith.negf %321 : vector<2x128xf32>
    %323 = math.exp %322 : vector<2x128xf32>
    %cst_65 = arith.constant 1.000000e+00 : f32
    %324 = vector.broadcast %cst_65 : f32 to vector<2x128xf32>
    %325 = arith.addf %324, %323 : vector<2x128xf32>
    %326 = arith.divf %324, %325 : vector<2x128xf32>
    %327 = vector.extract_strided_slice %326 {offsets = [0, 0], sizes = [2, 32], strides = [1, 1]} : vector<2x128xf32> to vector<2x32xf32>
    %328 = vector.extract_strided_slice %326 {offsets = [0, 32], sizes = [2, 32], strides = [1, 1]} : vector<2x128xf32> to vector<2x32xf32>
    %329 = vector.extract_strided_slice %326 {offsets = [0, 64], sizes = [2, 32], strides = [1, 1]} : vector<2x128xf32> to vector<2x32xf32>
    %cst_66 = arith.constant 2.000000e+00 : f32
    %330 = vector.broadcast %cst_66 : f32 to vector<2x32xf32>
    %331 = arith.mulf %330, %329 : vector<2x32xf32>
    %cst_67 = arith.constant 1.000000e+00 : f32
    %332 = vector.broadcast %cst_67 : f32 to vector<2x32xf32>
    %333 = arith.subf %331, %332 : vector<2x32xf32>
    %334 = vector.extract_strided_slice %326 {offsets = [0, 96], sizes = [2, 32], strides = [1, 1]} : vector<2x128xf32> to vector<2x32xf32>
    %335 = arith.mulf %328, %293 : vector<2x32xf32>
    %336 = arith.mulf %327, %333 : vector<2x32xf32>
    %337 = arith.addf %335, %336 : vector<2x32xf32>
    %338 = math.tanh %337 : vector<2x32xf32>
    %339 = arith.mulf %334, %338 : vector<2x32xf32>
    %340 = tpu.concatenate %339, %317 in 1 : vector<2x32xf32>, vector<2x32xf32> -> vector<2x64xf32>
    %cst_68 = arith.constant dense<0.000000e+00> : vector<2x128xf32>
    %341 = tpu.matmul %340, %3, %cst_68 {dimension_numbers = #tpu.dot_dimension_numbers<[1], [0], [0], [1], [0, 0, 1, 1], [], []>} : vector<2x64xf32>, vector<64x128xf32>, vector<2x128xf32> -> vector<2x128xf32>
    %342 = vector.broadcast %4 : vector<1x128xf32> to vector<2x128xf32>
    %343 = arith.addf %341, %342 : vector<2x128xf32>
    %344 = arith.negf %343 : vector<2x128xf32>
    %345 = math.exp %344 : vector<2x128xf32>
    %cst_69 = arith.constant 1.000000e+00 : f32
    %346 = vector.broadcast %cst_69 : f32 to vector<2x128xf32>
    %347 = arith.addf %346, %345 : vector<2x128xf32>
    %348 = arith.divf %346, %347 : vector<2x128xf32>
    %349 = vector.extract_strided_slice %348 {offsets = [0, 0], sizes = [2, 32], strides = [1, 1]} : vector<2x128xf32> to vector<2x32xf32>
    %350 = vector.extract_strided_slice %348 {offsets = [0, 32], sizes = [2, 32], strides = [1, 1]} : vector<2x128xf32> to vector<2x32xf32>
    %351 = vector.extract_strided_slice %348 {offsets = [0, 64], sizes = [2, 32], strides = [1, 1]} : vector<2x128xf32> to vector<2x32xf32>
    %cst_70 = arith.constant 2.000000e+00 : f32
    %352 = vector.broadcast %cst_70 : f32 to vector<2x32xf32>
    %353 = arith.mulf %352, %351 : vector<2x32xf32>
    %cst_71 = arith.constant 1.000000e+00 : f32
    %354 = vector.broadcast %cst_71 : f32 to vector<2x32xf32>
    %355 = arith.subf %353, %354 : vector<2x32xf32>
    %356 = vector.extract_strided_slice %348 {offsets = [0, 96], sizes = [2, 32], strides = [1, 1]} : vector<2x128xf32> to vector<2x32xf32>
    %357 = arith.mulf %350, %315 : vector<2x32xf32>
    %358 = arith.mulf %349, %355 : vector<2x32xf32>
    %359 = arith.addf %357, %358 : vector<2x32xf32>
    %360 = math.tanh %359 : vector<2x32xf32>
    %361 = arith.mulf %356, %360 : vector<2x32xf32>
    %c128 = arith.constant 128 : index
    %c0_72 = arith.constant 0 : index
    %362 = vector.load %arg2[%c128, %c0_72] : memref<184x128xf32, #tpu.memory_space<vmem>>, vector<32x128xf32>
    %c160 = arith.constant 160 : index
    %c0_73 = arith.constant 0 : index
    %363 = vector.load %arg2[%c160, %c0_73] : memref<184x128xf32, #tpu.memory_space<vmem>>, vector<1x128xf32>
    %c168 = arith.constant 168 : index
    %c0_74 = arith.constant 0 : index
    %364 = vector.load %arg2[%c168, %c0_74] : memref<184x128xf32, #tpu.memory_space<vmem>>, vector<1x128xf32>
    %c176 = arith.constant 176 : index
    %c0_75 = arith.constant 0 : index
    %365 = vector.load %arg2[%c176, %c0_75] : memref<184x128xf32, #tpu.memory_space<vmem>>, vector<1x128xf32>
    %cst_76 = arith.constant dense<0.000000e+00> : vector<2x128xf32>
    %366 = tpu.matmul %361, %362, %cst_76 {dimension_numbers = #tpu.dot_dimension_numbers<[1], [0], [0], [1], [0, 0, 1, 1], [], []>} : vector<2x32xf32>, vector<32x128xf32>, vector<2x128xf32> -> vector<2x128xf32>
    %367 = vector.broadcast %363 : vector<1x128xf32> to vector<2x128xf32>
    %368 = arith.addf %366, %367 : vector<2x128xf32>
    %cst_77 = arith.constant 0.000000e+00 : f32
    %369 = vector.broadcast %cst_77 : f32 to vector<2x128xf32>
    %370 = arith.maximumf %368, %369 : vector<2x128xf32>
    %371 = vector.broadcast %364 : vector<1x128xf32> to vector<2x128xf32>
    %372 = arith.mulf %370, %371 : vector<2x128xf32>
    %cst_78 = arith.constant dense<0.000000e+00> : vector<2xf32>
    %373 = vector.multi_reduction <add>, %372, %cst_78 [1] : vector<2x128xf32> to vector<2xf32>
    %374 = vector.shape_cast %373 : vector<2xf32> to vector<2x1xf32>
    %375 = vector.extract_strided_slice %365 {offsets = [0, 0], sizes = [1, 1], strides = [1, 1]} : vector<1x128xf32> to vector<1x1xf32>
    %376 = vector.broadcast %375 : vector<1x1xf32> to vector<2x1xf32>
    %377 = arith.addf %374, %376 : vector<2x1xf32>
    %378 = arith.negf %377 : vector<2x1xf32>
    %379 = math.exp %378 : vector<2x1xf32>
    %cst_79 = arith.constant 1.000000e+00 : f32
    %380 = vector.broadcast %cst_79 : f32 to vector<2x1xf32>
    %381 = arith.addf %380, %379 : vector<2x1xf32>
    %382 = arith.divf %380, %381 : vector<2x1xf32>
    %c0_80 = arith.constant 0 : index
    %c0_81 = arith.constant 0 : index
    %383 = vector.load %arg3[%c0_80, %c0_81] : memref<2x1xf32, #tpu.memory_space<vmem>>, vector<2x1xf32>
    tpu.vector_store %arg3[%c0_80, %c0_81], %382 {strides = array<i32>} : memref<2x1xf32, #tpu.memory_space<vmem>>, vector<2x1xf32>,
    return
  }
  func.func @transform_0(%arg0: i32) -> (i32, i32, i32) {
    %c0_i32 = arith.constant 0 : i32
    %c0_i32_0 = arith.constant 0 : i32
    %c0_i32_1 = arith.constant 0 : i32
    %c0_i32_2 = arith.constant 0 : i32
    return %c0_i32, %c0_i32_0, %c0_i32_1 : i32, i32, i32
  }
  func.func @transform_1(%arg0: i32) -> (i32, i32) {
    %c0_i32 = arith.constant 0 : i32
    %c0_i32_0 = arith.constant 0 : i32
    %c0_i32_1 = arith.constant 0 : i32
    return %c0_i32, %c0_i32_0 : i32, i32
  }
  func.func @transform_2(%arg0: i32) -> (i32, i32) {
    %c0_i32 = arith.constant 0 : i32
    %c0_i32_0 = arith.constant 0 : i32
    %c0_i32_1 = arith.constant 0 : i32
    return %c0_i32, %c0_i32_0 : i32, i32
  }
}

</mosaic_0001>

<bundles_post_ra>
// kernel: lstm_classifier_forward.1
= control target key start
LH: loop header
LB: loop body
LE: loop exit
PB: predicated region body
PF: predicated region fallthrough
CT: control target
= control target key end

     0   :  { %7 = vsyncpa [#allocation3], 0  ;;  %s3384_s0 = inlined_call_operand.hbm [shape: f32[2,8,16], index: 0, kind: input, shape index: {}]   ;;  %s3385_s1 = inlined_call_operand.hbm [shape: f32[184,128], index: 1, kind: input, shape index: {}]   ;;  %s3386_s2 = inlined_call_operand.vmem [shape: f32[2,1], index: 2, kind: output, shape index: {}]  }
   0x1   :  { %8 = vsyncpa [#allocation5], 0  ;;  %s2839_s9 = smov [#allocation2]  }
   0x2   :  { %s14_s10 = sshll.u32 %s2839_s9, 4  ;;  %s15_s10 = int_to_ptr.vmem [resolvable:$true] %s14_s10 }
   0x3   :  { %s2803_s11 = scalar_lea.vmem %s15_s10, 256  ;;  %p2808_p1 = scmp.lt.s32.totalorder %s15_s10, %s15_s10 }
   0x4   :  { %p2804_p0 = scmp.ne.s32.totalorder %s15_s10, %s2803_s11  ;;  %p2809_p2 = scmp.lt.s32.totalorder %s2803_s11, %s2803_s11 }
   0x6   :  { %p2810_p3 = por %p2809_p2, %p2808_p1 }
   0x8   :  { %p2811_p4 = pnand %p2810_p3, %p2804_p0 }
   0xa   :  { %2814 = shalt.err (!%p2811_p4)
}
   0xb   :  { %s2840_s12 = smov 128   ;;  %s2841_s13 = smov 8  }
   0xc   :  { %20 = dma.hbm_to_vmem [thread:$0]  %s3384_s0, 256, %s15_s10, [#allocation3], %s2840_s12, %s2840_s12, %s2841_s13  }
   0xd   :  { %s2842_s16 = smov [#allocation4]  }
   0xe   :  { %s26_s17 = sshll.u32 %s2842_s16, 4  ;;  %s27_s17 = int_to_ptr.vmem [resolvable:$true] %s26_s17 }
   0xf   :  { %s2823_s18 = scalar_lea.vmem %s27_s17, 2944  ;;  %p2828_p6 = scmp.lt.s32.totalorder %s27_s17, %s27_s17 }
  0x10   :  { %p2824_p5 = scmp.ne.s32.totalorder %s27_s17, %s2823_s18  ;;  %p2829_p7 = scmp.lt.s32.totalorder %s2823_s18, %s2823_s18 }
  0x12   :  { %p2830_p8 = por %p2829_p7, %p2828_p6 }
  0x14   :  { %p2831_p9 = pnand %p2830_p8, %p2824_p5 }
  0x16   :  { %2834 = shalt.err (!%p2831_p9)
}
  0x17   :  { %32 = dma.hbm_to_vmem [thread:$0]  %s3385_s1, 2944, %s27_s17, [#allocation5], %s2840_s12, %s2840_s12, %s2841_s13  }
  0x18   :  { %2835 = dma.done.wait [#allocation3], 256  }
  0x19   :  { %2836 = vsyncadd [#allocation3], 4294967040 }
  0x1a   :  { %2837 = dma.done.wait [#allocation5], 2944  }
  0x1b   :  { %2838 = vsyncadd [#allocation5], 4294964352  ;;  %vm61_vm0 = vcmask 130048   ;;  %v40_v0 = vld [vmem:[#allocation4 + $0x8] sm:$0xff]  ;;  %v39_v1 = vld [vmem:[#allocation4] sm:$0xff]  ;;  %s2843_s0 = smov 64  }
  0x1c   :  { %v55_v2 = vld [vmem:[#allocation2] sm:$0xff]  ;;  %2379 = vmatprep.subr.mxu0 %v40_v0  ;;  %v56_v3 = vld [vmem:[#allocation2 + $0x8] sm:$0xff]  ;;  %s2844_s1 = smov 32   ;;  %v2845_v32 = vmov 0.0   ;;  %v2897_v33 = vld [vmem:[#allocation4 + $0x68] sm:$0xff]  ;;  %vm2846_vm1 = vmmov 0  }
  0x1d   :  { %2383 = vmatprep.mubr.msk.f32.mxu0 %vm61_vm0, %v55_v2  ;;  %2380 = vmatpush3.msra.mxu0 %v40_v0  ;;  %v2191_v4 = vld [vmem:[#allocation4 + $0x30] ss:$0 sm:$0xff]  ;;  %v2900_v34 = vld [vmem:[#allocation4 + $0x28] sm:$0xff]  ;;  %v2904_v35 = vld [vmem:[#allocation4 + $0x20] sm:$0xff]  ;;  %vm196_vm2 = vcmask 1041409   ;;  %vm201_vm3 = vcmask 261120  }
  0x1e   :  { %2381 = vmatprep.subr.mxu0 %v39_v1  ;;  %v2894_v31 = vld [vmem:[#allocation4 + $0x70] sm:$0xff]  ;;  %2386 = vmatprep.subr.mxu1 %v2845_v32  ;;  %v2907_v36 = vld [vmem:[#allocation4 + $0x60] sm:$0xff]  ;;  %v2912_v37 = vld [vmem:[#allocation4 + $0x18] sm:$0xff]  ;;  %vm207_vm4 = vcmask 523264   ;;  %vm443_vm5 = vcmask 1042434   ;;  %vm695_vm6 = vcmask 1043459  }
  0x1f   :  { %2382 = vmatpush3.msra.mxu0 %v39_v1  ;;  %2387 = vmatpush3.msra.mxu1 %v2894_v31  ;;  %v2915_v39 = vld [vmem:[#allocation4 + $0x58] sm:$0xff]  ;;  %v2920_v40 = vld [vmem:[#allocation4 + $0x10] sm:$0xff]  ;;  %v2929_v43 = vld [vmem:[#allocation4 + $0x48] sm:$0xff]  ;;  %vm948_vm7 = vcmask 1044484   ;;  %vm1201_vm8 = vcmask 1045509   ;;  %vm1454_vm9 = vcmask 1046534  }
  0x20   :  { %2384 = vmatmul.mubr.msk.f32.vlgmr.msra.gmra.mxu0 %vm61_vm0, %v56_v3  ;;  %2405 = vmatprep.subr.mxu0 %v2845_v32  ;;  %v2923_v41 = vld [vmem:[#allocation4 + $0x50] sm:$0xff]  ;;  %v2935_v44 = vld [vmem:[#allocation4 + $0x40] sm:$0xff]  ;;  %v2946_v45 = vld [vmem:[#allocation4 + $0x38] sm:$0xff]  ;;  %vm1707_vm10 = vcmask 1047559   ;;  %vm1975_vm11 = vcmask 1040384   ;;  %vm2168_vm12 = vcmask 1041408  }
  0x21   :  { %2406 = vmatpush3.msra.mxu0 %v2900_v34  ;;  %2388 = vmatprep.subr.mxu1 %v2845_v32  ;;  %v2985_v54 = vld [vmem:[#allocation4 + $0x78] ss:$0 sm:$0xff]  ;;  %vm2183_vm13 = vcmask 1024  }
  0x22   :  { %2407 = vmatprep.subr.mxu0 %v2845_v32  ;;  %2389 = vmatpush3.msra.mxu1 %v2897_v33 }
  0x23   :  { %2408 = vmatpush3.msra.mxu0 %v2904_v35  ;;  %2390 = vmatprep.subr.mxu1 %v2845_v32 }
  0x24   :  { %2409 = vmatprep.subr.mxu0 %v2845_v32  ;;  %2391 = vmatpush3.msra.mxu1 %v2907_v36 }
  0x25   :  { %2392 = vmatprep.subr.mxu1 %v2845_v32  ;;  %2410 = vmatpush3.msra.mxu0 %v2912_v37 }
  0x26   :  { %2393 = vmatpush3.msra.mxu1 %v2915_v39  ;;  %2411 = vmatprep.subr.mxu0 %v2845_v32 }
  0x27   :  { %2394 = vmatprep.subr.mxu1 %v2845_v32  ;;  %2412 = vmatpush3.msra.mxu0 %v2920_v40 }
  0x28   :  { %2395 = vmatpush3.msra.mxu1 %v2923_v41  ;;  %2413 = vmatprep.mubr.msk.f32.mxu0 %vm2846_vm1, %v2845_v32 }
  0x29   :  { %2396 = vmatprep.subr.mxu1 %v2845_v32  ;;  %2402 = vmatprep.mubr.msk.f32.mxu1 %vm2846_vm1, %v2845_v32 }
  0x2a   :  { %2397 = vmatpush3.msra.mxu1 %v2929_v43  ;;  %2416 = vmatprep.subr.mxu0 %v2845_v32 }
  0x2b   :  { %2398 = vmatprep.subr.mxu1 %v2845_v32 }
  0x2c   :  { %2399 = vmatpush3.msra.mxu1 %v2935_v44 }
  0x2d   :  { %2400 = vmatprep.subr.mxu1 %v2845_v32 }
  0x2e   :  { %2401 = vmatpush3.msra.mxu1 %v2946_v45 }
  0x2f   :  { %2435 = vmatprep.subr.mxu1 %v2845_v32 }
  0xe0   :  { %v2385_v5 = vpop.f32.mrf.mxu0 }
  0xe1   :  { %v2868_v6 = vadd.f32 %v2385_v5, %v2191_v4 }
  0xe2   :  { %v134_v7 = vpop.f32.mrf.mxu0 }
  0xe3   :  { %v2195_v8 = vmul.f32 -1.442695, %v2868_v6  ;;  %v2871_v9 = vadd.f32 %v2191_v4, %v134_v7 }
  0xe5   :  { %2634 = vpow2.f32 %v2195_v8  ;;  %v2194_v10 = vmul.f32 -1.442695, %v2871_v9 }
  0xe7   :  { %2636 = vpow2.f32 %v2194_v10 }
  0xf2   :  { %v2635_v11 = vpop.eup %2634 }
  0xf3   :  { %v150_v12 = vadd.f32 1.0, %v2635_v11 }
  0xf4   :  { %v2637_v13 = vpop.eup %2636 }
  0xf5   :  { %2638 = vrcp.f32 %v150_v12  ;;  %v149_v14 = vadd.f32 1.0, %v2637_v13 }
  0xf7   :  { %2640 = vrcp.f32 %v149_v14 }
 0x102   :  { %v2874_v15 = vpop.eup %2638 }
 0x103   :  { %v156_v16 = vmul.f32 2.0, %v2874_v15  ;;  %v160_v25 = vmul.f32 0.0, %v2874_v15 }
 0x104   :  { %v2877_v17 = vpop.eup %2640 }
 0x105   :  { %v2197_v18 = vadd.f32 -1.0, %v156_v16  ;;  %v155_v19 = vmul.f32 2.0, %v2877_v17  ;;  %v159_v28 = vmul.f32 0.0, %v2877_v17 }
 0x107   :  { %165 = vrot.lane.b32.xlu0 %v2197_v18, %s2843_s0  ;;  %v2196_v20 = vadd.f32 -1.0, %v155_v19 }
 0x10b   :  { %163 = vrot.lane.b32.xlu0 %v2196_v20, %s2843_s0 }
 0x179   :  { %v166_v21 = vpop.permute.xlu0 %165 }
 0x17a   :  { %v170_v22 = vmul.f32 %v2874_v15, %v166_v21 }
 0x17c   :  { %175 = vrot.lane.b32.xlu1 %v170_v22, %s2844_s1 }
 0x17d   :  { %v164_v23 = vpop.permute.xlu0 %163 }
 0x17e   :  { %v169_v24 = vmul.f32 %v2877_v17, %v164_v23 }
 0x180   :  { %173 = vrot.lane.b32.xlu1 %v169_v24, %s2844_s1 }
 0x1ee   :  { %v176_v26 = vpop.permute.xlu1 %175 }
 0x1ef   :  { %v2887_v27 = vadd.f32 %v176_v26, %v160_v25 }
 0x1f1   :  { %2642 = vtanh.f32 %v2887_v27  ;;  %v403_v25 = vrot.slane %v2887_v27, 7 }
 0x1f2   :  { %v174_v29 = vpop.permute.xlu1 %173 }
 0x1f3   :  { %v2891_v30 = vadd.f32 %v174_v29, %v159_v28 }
 0x1f5   :  { %2644 = vtanh.f32 %v2891_v30  ;;  %v402_v26 = vrot.slane %v2891_v30, 7 }
 0x1fe   :  { %v2643_v38 = vpop.eup %2642 }
 0x1ff   :  { %187 = vrot.lane.b32.xlu0 %v2643_v38, %s2843_s0 }
 0x202   :  { %v2645_v42 = vpop.eup %2644 }
 0x203   :  { %185 = vrot.lane.b32.xlu1 %v2645_v42, %s2843_s0 }
 0x271   :  { %v188_v46 = vpop.permute.xlu0 %187 }
 0x272   :  { %v192_v47 = vmul.f32 %v2874_v15, %v188_v46 }
 0x274   :  { %v195_v49 = vrot.slane %v192_v47, 7 }
 0x275   :  { %v186_v48 = vpop.permute.xlu1 %185 }
 0x276   :  { %v191_v50 = vmul.f32 %v2877_v17, %v186_v48 }
 0x278   :  { %v197_v51 = vsel %vm196_vm2, %v195_v49, %v191_v50 }
 0x279   :  { %198 = vrot.lane.b32.xlu0 %v197_v51, %s2844_s1 }
 0x2eb   :  { %v199_v52 = vpop.permute.xlu0 %198 }
 0x2ec   :  { %v202_v53 = vsel %vm201_vm3, %v199_v52, 0.0  ;;  %2414 = vmatmul.mubr.msk.f32.vlgmr.msra.gmra.mxu0 %vm201_vm3, %v199_v52 }
 0x2ed   :  { %2403 = vmatmul.mubr.msk.f32.vlgmr.msra.gmra.mxu1 %vm207_vm4, %v202_v53  ;;  %2417 = vmatpush3.msra.mxu0 %v2894_v31 }
 0x2ee   :  { %2418 = vmatprep.subr.mxu0 %v2845_v32  ;;  %2436 = vmatpush3.msra.mxu1 %v2900_v34 }
 0x2ef   :  { %2419 = vmatpush3.msra.mxu0 %v2897_v33  ;;  %2437 = vmatprep.subr.mxu1 %v2845_v32 }
 0x2f0   :  { %2420 = vmatprep.subr.mxu0 %v2845_v32  ;;  %2438 = vmatpush3.msra.mxu1 %v2904_v35 }
 0x2f1   :  { %2421 = vmatpush3.msra.mxu0 %v2907_v36  ;;  %2439 = vmatprep.subr.mxu1 %v2845_v32 }
 0x2f2   :  { %2422 = vmatprep.subr.mxu0 %v2845_v32  ;;  %2440 = vmatpush3.msra.mxu1 %v2912_v37 }
 0x2f3   :  { %2423 = vmatpush3.msra.mxu0 %v2915_v39  ;;  %2441 = vmatprep.subr.mxu1 %v2845_v32 }
 0x2f4   :  { %2424 = vmatprep.subr.mxu0 %v2845_v32  ;;  %2442 = vmatpush3.msra.mxu1 %v2920_v40 }
 0x2f5   :  { %2425 = vmatpush3.msra.mxu0 %v2923_v41  ;;  %2443 = vmatprep.mubr.msk.f32.mxu1 %vm2846_vm1, %v2845_v32 }
 0x2f6   :  { %2426 = vmatprep.subr.mxu0 %v2845_v32  ;;  %2432 = vmatprep.mubr.msk.f32.mxu0 %vm2846_vm1, %v2845_v32 }
 0x2f7   :  { %2427 = vmatpush3.msra.mxu0 %v2929_v43  ;;  %2446 = vmatprep.subr.mxu1 %v2845_v32 }
 0x2f8   :  { %2428 = vmatprep.subr.mxu0 %v2845_v32 }
 0x2f9   :  { %2429 = vmatpush3.msra.mxu0 %v2935_v44 }
 0x2fa   :  { %2430 = vmatprep.subr.mxu0 %v2845_v32 }
 0x2fb   :  { %2431 = vmatpush3.msra.mxu0 %v2946_v45 }
 0x2fc   :  { %2465 = vmatprep.subr.mxu0 %v2845_v32 }
 0x3ac   :  { %v374_v55 = vpop.f32.mrf.mxu0 }
 0x3ad   :  { %v379_v56 = vrot.slane %v374_v55, 7  ;;  %v383_v57 = vadd.f32 %v374_v55, %v2868_v6  ;;  %v277_v58 = vpop.f32.mrf.mxu1 }
 0x3ae   :  { %v278_v59 = vadd.f32 %v2985_v54, %v277_v58  ;;  %v2415_v60 = vpop.f32.mrf.mxu0 }
 0x3af   :  { %v382_v61 = vadd.f32 %v379_v56, %v2871_v9  ;;  %v2204_v62 = vmul.f32 -1.442695, %v383_v57  ;;  %v2404_v63 = vpop.f32.mrf.mxu1 }
 0x3b0   :  { %v2200_v0 = vmul.f32 -1.442695, %v278_v59 }
 0x3b1   :  { %v2203_v1 = vmul.f32 -1.442695, %v382_v61  ;;  %2646 = vpow2.f32 %v2204_v62 }
 0x3b2   :  { %2648 = vpow2.f32 %v2200_v0 }
 0x3b3   :  { %2650 = vpow2.f32 %v2203_v1 }
 0x3be   :  { %v2647_v2 = vpop.eup %2646 }
 0x3bf   :  { %v2649_v3 = vpop.eup %2648  ;;  %v391_v4 = vadd.f32 1.0, %v2647_v2 }
 0x3c0   :  { %v2651_v5 = vpop.eup %2650  ;;  %v284_v7 = vadd.f32 1.0, %v2649_v3 }
 0x3c1   :  { %v390_v8 = vadd.f32 1.0, %v2651_v5  ;;  %2652 = vrcp.f32 %v391_v4 }
 0x3c2   :  { %2654 = vrcp.f32 %v284_v7 }
 0x3c3   :  { %2656 = vrcp.f32 %v390_v8 }
 0x3ce   :  { %v2653_v10 = vpop.eup %2652 }
 0x3cf   :  { %v2655_v11 = vpop.eup %2654  ;;  %v397_v12 = vmul.f32 2.0, %v2653_v10  ;;  %v407_v28 = vmul.f32 %v2653_v10, %v403_v25 }
 0x3d0   :  { %v2657_v13 = vpop.eup %2656  ;;  %v287_v17 = vmul.f32 2.0, %v2655_v11  ;;  %v289_v48 = vmul.f32 0.0, %v2655_v11 }
 0x3d1   :  { %v2206_v14 = vadd.f32 -1.0, %v397_v12  ;;  %v396_v15 = vmul.f32 2.0, %v2657_v13  ;;  %v406_v42 = vmul.f32 %v2657_v13, %v402_v26 }
 0x3d2   :  { %v2201_v18 = vadd.f32 -1.0, %v287_v17 }
 0x3d3   :  { %412 = vrot.lane.b32.xlu0 %v2206_v14, %s2843_s0  ;;  %v2205_v16 = vadd.f32 -1.0, %v396_v15 }
 0x3d5   :  { %410 = vrot.lane.b32.xlu1 %v2205_v16, %s2843_s0 }
 0x3d9   :  { %291 = vrot.lane.b32.xlu1 %v2201_v18, %s2843_s0 }
 0x445   :  { %v413_v19 = vpop.permute.xlu0 %412 }
 0x446   :  { %v417_v20 = vmul.f32 %v2653_v10, %v413_v19 }
 0x447   :  { %v411_v21 = vpop.permute.xlu1 %410 }
 0x448   :  { %v416_v22 = vmul.f32 %v2657_v13, %v411_v21  ;;  %422 = vrot.lane.b32.xlu1 %v417_v20, %s2844_s1 }
 0x44a   :  { %420 = vrot.lane.b32.xlu0 %v416_v22, %s2844_s1 }
 0x44b   :  { %v292_v23 = vpop.permute.xlu1 %291 }
 0x44c   :  { %v294_v24 = vmul.f32 %v2655_v11, %v292_v23 }
 0x44e   :  { %296 = vrot.lane.b32.xlu0 %v294_v24, %s2844_s1 }
 0x4ba   :  { %v423_v29 = vpop.permute.xlu1 %422 }
 0x4bb   :  { %v2998_v38 = vadd.f32 %v423_v29, %v407_v28 }
 0x4bc   :  { %v421_v46 = vpop.permute.xlu0 %420 }
 0x4bd   :  { %2658 = vtanh.f32 %v2998_v38  ;;  %v3001_v47 = vadd.f32 %v421_v46, %v406_v42 }
 0x4bf   :  { %2660 = vtanh.f32 %v3001_v47 }
 0x4c0   :  { %v297_v49 = vpop.permute.xlu0 %296 }
 0x4c1   :  { %v3004_v50 = vadd.f32 %v297_v49, %v289_v48 }
 0x4c3   :  { %2662 = vtanh.f32 %v3004_v50 }
 0x4ca   :  { %v2659_v27 = vpop.eup %2658 }
 0x4cb   :  { %434 = vrot.lane.b32.xlu0 %v2659_v27, %s2843_s0 }
 0x4cc   :  { %v2661_v30 = vpop.eup %2660 }
 0x4cd   :  { %432 = vrot.lane.b32.xlu1 %v2661_v30, %s2843_s0 }
 0x4d0   :  { %v2663_v51 = vpop.eup %2662 }
 0x4d1   :  { %302 = vrot.lane.b32.xlu1 %v2663_v51, %s2843_s0 }
 0x53d   :  { %v435_v52 = vpop.permute.xlu0 %434 }
 0x53e   :  { %v439_v53 = vmul.f32 %v2653_v10, %v435_v52 }
 0x53f   :  { %v433_v55 = vpop.permute.xlu1 %432 }
 0x540   :  { %v442_v56 = vrot.slane %v439_v53, 7  ;;  %v438_v57 = vmul.f32 %v2657_v13, %v433_v55 }
 0x542   :  { %v553_v58 = vrot.slane %v438_v57, 1  ;;  %v444_v59 = vsel %vm443_vm5, %v442_v56, %v438_v57  ;;  %v654_v57 = vrot.slane %v3001_v47, 7 }
 0x543   :  { %445 = vrot.lane.b32.xlu0 %v444_v59, %s2844_s1  ;;  %v303_v60 = vpop.permute.xlu1 %302 }
 0x544   :  { %v305_v61 = vmul.f32 %v2655_v11, %v303_v60  ;;  %v554_v63 = vsel %vm196_vm2, %v439_v53, %v553_v58  ;;  %v655_v58 = vrot.slane %v2998_v38, 7 }
 0x546   :  { %v449_v62 = vrot.slane %v305_v61, 7 }
 0x547   :  { %555 = vrot.lane.b32.xlu0 %v554_v63, %s2844_s1 }
 0x548   :  { %450 = vrot.lane.b32.xlu1 %v449_v62, %s2843_s0 }
 0x5b5   :  { %v446_v0 = vpop.permute.xlu0 %445 }
 0x5b9   :  { %v556_v1 = vpop.permute.xlu0 %555 }
 0x5ba   :  { %2444 = vmatmul.mubr.msk.f32.vlgmr.msra.gmra.mxu1 %vm201_vm3, %v556_v1  ;;  %v451_v2 = vpop.permute.xlu1 %450 }
 0x5bb   :  { %v453_v3 = vsel %vm201_vm3, %v446_v0, %v451_v2  ;;  %2447 = vmatpush3.msra.mxu1 %v2894_v31  ;;  %2462 = vmatprep.mubr.msk.f32.mxu1 %vm2846_vm1, %v2845_v32 }
 0x5bc   :  { %v455_v4 = vrot.slane %v453_v3, 1  ;;  %2448 = vmatprep.subr.mxu1 %v2845_v32 }
 0x5bd   :  { %2449 = vmatpush3.msra.mxu1 %v2897_v33 }
 0x5be   :  { %2433 = vmatmul.mubr.msk.f32.vlgmr.msra.gmra.mxu0 %vm207_vm4, %v455_v4  ;;  %2450 = vmatprep.subr.mxu1 %v2845_v32 }
 0x5bf   :  { %2451 = vmatpush3.msra.mxu1 %v2907_v36  ;;  %2466 = vmatpush3.msra.mxu0 %v2900_v34 }
 0x5c0   :  { %2452 = vmatprep.subr.mxu1 %v2845_v32  ;;  %2467 = vmatprep.subr.mxu0 %v2845_v32 }
 0x5c1   :  { %2453 = vmatpush3.msra.mxu1 %v2915_v39  ;;  %2468 = vmatpush3.msra.mxu0 %v2904_v35 }
 0x5c2   :  { %2454 = vmatprep.subr.mxu1 %v2845_v32  ;;  %2469 = vmatprep.subr.mxu0 %v2845_v32 }
 0x5c3   :  { %2455 = vmatpush3.msra.mxu1 %v2923_v41  ;;  %2470 = vmatpush3.msra.mxu0 %v2912_v37 }
 0x5c4   :  { %2456 = vmatprep.subr.mxu1 %v2845_v32  ;;  %2471 = vmatprep.subr.mxu0 %v2845_v32 }
 0x5c5   :  { %2457 = vmatpush3.msra.mxu1 %v2929_v43  ;;  %2472 = vmatpush3.msra.mxu0 %v2920_v40 }
 0x5c6   :  { %2458 = vmatprep.subr.mxu1 %v2845_v32  ;;  %2473 = vmatprep.mubr.msk.f32.mxu0 %vm2846_vm1, %v2845_v32 }
 0x5c7   :  { %2459 = vmatpush3.msra.mxu1 %v2935_v44  ;;  %2476 = vmatprep.subr.mxu0 %v2845_v32 }
 0x5c8   :  { %2460 = vmatprep.subr.mxu1 %v2845_v32 }
 0x5c9   :  { %2461 = vmatpush3.msra.mxu1 %v2946_v45 }
 0x5ca   :  { %2495 = vmatprep.subr.mxu1 %v2845_v32 }
 0x67a   :  { %v625_v5 = vpop.f32.mrf.mxu1 }
 0x67b   :  { %v630_v7 = vrot.slane %v625_v5, 6  ;;  %v631_v8 = vrot.slane %v625_v5, 7 }
 0x67c   :  { %v2445_v10 = vpop.f32.mrf.mxu1 }
 0x67d   :  { %v634_v11 = vadd.f32 %v630_v7, %v2871_v9  ;;  %v635_v12 = vadd.f32 %v631_v8, %v2868_v6 }
 0x67e   :  { %v524_v13 = vpop.f32.mrf.mxu0 }
 0x67f   :  { %v2211_v14 = vmul.f32 -1.442695, %v634_v11  ;;  %v2212_v15 = vmul.f32 -1.442695, %v635_v12  ;;  %v525_v16 = vadd.f32 %v2985_v54, %v524_v13 }
 0x680   :  { %v2434_v17 = vpop.f32.mrf.mxu0 }
 0x681   :  { %2664 = vpow2.f32 %v2211_v14  ;;  %v2208_v18 = vmul.f32 -1.442695, %v525_v16 }
 0x682   :  { %2666 = vpow2.f32 %v2212_v15 }
 0x683   :  { %2668 = vpow2.f32 %v2208_v18 }
 0x68e   :  { %v2665_v19 = vpop.eup %2664 }
 0x68f   :  { %v2667_v20 = vpop.eup %2666  ;;  %v642_v21 = vadd.f32 1.0, %v2665_v19 }
 0x690   :  { %v2669_v22 = vpop.eup %2668  ;;  %v643_v23 = vadd.f32 1.0, %v2667_v20 }
 0x691   :  { %2670 = vrcp.f32 %v642_v21  ;;  %v531_v24 = vadd.f32 1.0, %v2669_v22 }
 0x692   :  { %2672 = vrcp.f32 %v643_v23 }
 0x693   :  { %2674 = vrcp.f32 %v531_v24 }
 0x69e   :  { %v2671_v25 = vpop.eup %2670 }
 0x69f   :  { %v2673_v26 = vpop.eup %2672  ;;  %v648_v28 = vmul.f32 2.0, %v2671_v25  ;;  %v658_v59 = vmul.f32 %v2671_v25, %v654_v57 }
 0x6a0   :  { %v2675_v29 = vpop.eup %2674  ;;  %v649_v42 = vmul.f32 2.0, %v2673_v26  ;;  %v659_v61 = vmul.f32 %v2673_v26, %v655_v58 }
 0x6a1   :  { %v2213_v46 = vadd.f32 -1.0, %v648_v28  ;;  %v534_v48 = vmul.f32 2.0, %v2675_v29  ;;  %v536_v1 = vmul.f32 %v2675_v29, %v3004_v50 }
 0x6a2   :  { %v2214_v49 = vadd.f32 -1.0, %v649_v42 }
 0x6a3   :  { %662 = vrot.lane.b32.xlu1 %v2213_v46, %s2843_s0  ;;  %v2209_v27 = vadd.f32 -1.0, %v534_v48 }
 0x6a4   :  { %664 = vrot.lane.b32.xlu0 %v2214_v49, %s2843_s0 }
 0x6a7   :  { %538 = vrot.lane.b32.xlu1 %v2209_v27, %s2843_s0 }
 0x715   :  { %v663_v30 = vpop.permute.xlu1 %662 }
 0x716   :  { %v665_v51 = vpop.permute.xlu0 %664  ;;  %v668_v52 = vmul.f32 %v2671_v25, %v663_v30 }
 0x717   :  { %v669_v53 = vmul.f32 %v2673_v26, %v665_v51 }
 0x718   :  { %672 = vrot.lane.b32.xlu0 %v668_v52, %s2844_s1 }
 0x719   :  { %674 = vrot.lane.b32.xlu1 %v669_v53, %s2844_s1  ;;  %v539_v55 = vpop.permute.xlu1 %538 }
 0x71a   :  { %v541_v56 = vmul.f32 %v2675_v29, %v539_v55 }
 0x71c   :  { %543 = vrot.lane.b32.xlu0 %v541_v56, %s2844_s1 }
 0x78a   :  { %v673_v60 = vpop.permute.xlu0 %672 }
 0x78b   :  { %v3056_v62 = vadd.f32 %v673_v60, %v658_v59  ;;  %v675_v63 = vpop.permute.xlu1 %674 }
 0x78c   :  { %v3058_v0 = vadd.f32 %v675_v63, %v659_v61 }
 0x78d   :  { %2676 = vtanh.f32 %v3056_v62 }
 0x78e   :  { %2678 = vtanh.f32 %v3058_v0  ;;  %v544_v2 = vpop.permute.xlu0 %543 }
 0x78f   :  { %v3063_v3 = vadd.f32 %v544_v2, %v536_v1 }
 0x791   :  { %2680 = vtanh.f32 %v3063_v3 }
 0x79a   :  { %v2677_v38 = vpop.eup %2676 }
 0x79b   :  { %v2679_v47 = vpop.eup %2678  ;;  %684 = vrot.lane.b32.xlu1 %v2677_v38, %s2843_s0 }
 0x79c   :  { %686 = vrot.lane.b32.xlu0 %v2679_v47, %s2843_s0 }
 0x79e   :  { %v2681_v4 = vpop.eup %2680 }
 0x79f   :  { %549 = vrot.lane.b32.xlu1 %v2681_v4, %s2843_s0 }
 0x80d   :  { %v685_v5 = vpop.permute.xlu1 %684 }
 0x80e   :  { %v687_v7 = vpop.permute.xlu0 %686  ;;  %v690_v50 = vmul.f32 %v2671_v25, %v685_v5 }
 0x80f   :  { %v691_v8 = vmul.f32 %v2673_v26, %v687_v7 }
 0x810   :  { %v805_v14 = vrot.slane %v690_v50, 2 }
 0x811   :  { %v694_v10 = vrot.slane %v691_v8, 7  ;;  %v550_v11 = vpop.permute.xlu1 %549  ;;  %v806_v13 = vrot.slane %v691_v8, 1 }
 0x812   :  { %v552_v12 = vmul.f32 %v2675_v29, %v550_v11  ;;  %v907_v11 = vrot.slane %v3056_v62, 7 }
 0x813   :  { %v696_v15 = vsel %vm695_vm6, %v694_v10, %v690_v50  ;;  %v807_v17 = vsel %vm196_vm2, %v806_v13, %v805_v14 }
 0x814   :  { %v701_v16 = vrot.slane %v552_v12, 6  ;;  %697 = vrot.lane.b32.xlu0 %v696_v15, %s2844_s1  ;;  %v908_v12 = vrot.slane %v3058_v0, 7 }
 0x816   :  { %702 = vrot.lane.b32.xlu1 %v701_v16, %s2843_s0 }
 0x818   :  { %808 = vrot.lane.b32.xlu0 %v807_v17, %s2844_s1 }
 0x886   :  { %v698_v18 = vpop.permute.xlu0 %697 }
 0x888   :  { %v703_v19 = vpop.permute.xlu1 %702 }
 0x889   :  { %v705_v20 = vsel %vm201_vm3, %v698_v18, %v703_v19 }
 0x88a   :  { %v707_v21 = vrot.slane %v705_v20, 2  ;;  %v809_v22 = vpop.permute.xlu0 %808 }
 0x88b   :  { %2474 = vmatmul.mubr.msk.f32.vlgmr.msra.gmra.mxu0 %vm201_vm3, %v809_v22 }
 0x88c   :  { %2463 = vmatmul.mubr.msk.f32.vlgmr.msra.gmra.mxu1 %vm207_vm4, %v707_v21  ;;  %2477 = vmatpush3.msra.mxu0 %v2894_v31 }
 0x88d   :  { %2478 = vmatprep.subr.mxu0 %v2845_v32  ;;  %2496 = vmatpush3.msra.mxu1 %v2900_v34 }
 0x88e   :  { %2479 = vmatpush3.msra.mxu0 %v2897_v33  ;;  %2497 = vmatprep.subr.mxu1 %v2845_v32 }
 0x88f   :  { %2480 = vmatprep.subr.mxu0 %v2845_v32  ;;  %2498 = vmatpush3.msra.mxu1 %v2904_v35 }
 0x890   :  { %2481 = vmatpush3.msra.mxu0 %v2907_v36  ;;  %2499 = vmatprep.subr.mxu1 %v2845_v32 }
 0x891   :  { %2482 = vmatprep.subr.mxu0 %v2845_v32  ;;  %2500 = vmatpush3.msra.mxu1 %v2912_v37 }
 0x892   :  { %2483 = vmatpush3.msra.mxu0 %v2915_v39  ;;  %2501 = vmatprep.subr.mxu1 %v2845_v32 }
 0x893   :  { %2484 = vmatprep.subr.mxu0 %v2845_v32  ;;  %2502 = vmatpush3.msra.mxu1 %v2920_v40 }
 0x894   :  { %2485 = vmatpush3.msra.mxu0 %v2923_v41  ;;  %2503 = vmatprep.mubr.msk.f32.mxu1 %vm2846_vm1, %v2845_v32 }
 0x895   :  { %2486 = vmatprep.subr.mxu0 %v2845_v32  ;;  %2492 = vmatprep.mubr.msk.f32.mxu0 %vm2846_vm1, %v2845_v32 }
 0x896   :  { %2487 = vmatpush3.msra.mxu0 %v2929_v43  ;;  %2506 = vmatprep.subr.mxu1 %v2845_v32 }
 0x897   :  { %2488 = vmatprep.subr.mxu0 %v2845_v32 }
 0x898   :  { %2489 = vmatpush3.msra.mxu0 %v2935_v44 }
 0x899   :  { %2490 = vmatprep.subr.mxu0 %v2845_v32 }
 0x89a   :  { %2491 = vmatpush3.msra.mxu0 %v2946_v45 }
 0x89b   :  { %2525 = vmatprep.subr.mxu0 %v2845_v32 }
 0x94b   :  { %v878_v23 = vpop.f32.mrf.mxu0 }
 0x94c   :  { %v883_v24 = vrot.slane %v878_v23, 5  ;;  %v884_v25 = vrot.slane %v878_v23, 6  ;;  %v776_v26 = vpop.f32.mrf.mxu1 }
 0x94d   :  { %v777_v28 = vadd.f32 %v2985_v54, %v776_v26  ;;  %v2475_v29 = vpop.f32.mrf.mxu0 }
 0x94e   :  { %v887_v42 = vadd.f32 %v883_v24, %v2871_v9  ;;  %v888_v46 = vadd.f32 %v884_v25, %v2868_v6  ;;  %v2464_v48 = vpop.f32.mrf.mxu1 }
 0x94f   :  { %v2216_v49 = vmul.f32 -1.442695, %v777_v28 }
 0x950   :  { %v2219_v27 = vmul.f32 -1.442695, %v887_v42  ;;  %v2220_v30 = vmul.f32 -1.442695, %v888_v46 }
 0x951   :  { %2682 = vpow2.f32 %v2216_v49 }
 0x952   :  { %2684 = vpow2.f32 %v2219_v27 }
 0x953   :  { %2686 = vpow2.f32 %v2220_v30 }
 0x95e   :  { %v2683_v51 = vpop.eup %2682 }
 0x95f   :  { %v2685_v52 = vpop.eup %2684  ;;  %v783_v53 = vadd.f32 1.0, %v2683_v51 }
 0x960   :  { %v2687_v55 = vpop.eup %2686  ;;  %v895_v56 = vadd.f32 1.0, %v2685_v52 }
 0x961   :  { %v896_v57 = vadd.f32 1.0, %v2687_v55  ;;  %2688 = vrcp.f32 %v783_v53 }
 0x962   :  { %2690 = vrcp.f32 %v895_v56 }
 0x963   :  { %2692 = vrcp.f32 %v896_v57 }
 0x96e   :  { %v2689_v58 = vpop.eup %2688 }
 0x96f   :  { %v2691_v59 = vpop.eup %2690  ;;  %v786_v2 = vmul.f32 2.0, %v2689_v58  ;;  %v788_v19 = vmul.f32 %v2689_v58, %v3063_v3 }
 0x970   :  { %v2693_v60 = vpop.eup %2692  ;;  %v901_v61 = vmul.f32 2.0, %v2691_v59  ;;  %v911_v13 = vmul.f32 %v2691_v59, %v907_v11 }
 0x971   :  { %v902_v63 = vmul.f32 2.0, %v2693_v60  ;;  %v2217_v47 = vadd.f32 -1.0, %v786_v2  ;;  %v912_v15 = vmul.f32 %v2693_v60, %v908_v12 }
 0x972   :  { %v2221_v1 = vadd.f32 -1.0, %v901_v61 }
 0x973   :  { %v2222_v38 = vadd.f32 -1.0, %v902_v63 }
 0x974   :  { %915 = vrot.lane.b32.xlu1 %v2221_v1, %s2843_s0 }
 0x975   :  { %917 = vrot.lane.b32.xlu0 %v2222_v38, %s2843_s0 }
 0x978   :  { %790 = vrot.lane.b32.xlu1 %v2217_v47, %s2843_s0 }
 0x9e6   :  { %v916_v4 = vpop.permute.xlu1 %915 }
 0x9e7   :  { %v918_v5 = vpop.permute.xlu0 %917  ;;  %v921_v7 = vmul.f32 %v2691_v59, %v916_v4 }
 0x9e8   :  { %v922_v8 = vmul.f32 %v2693_v60, %v918_v5 }
 0x9e9   :  { %925 = vrot.lane.b32.xlu0 %v921_v7, %s2844_s1 }
 0x9ea   :  { %927 = vrot.lane.b32.xlu1 %v922_v8, %s2844_s1  ;;  %v791_v50 = vpop.permute.xlu1 %790 }
 0x9eb   :  { %v793_v10 = vmul.f32 %v2689_v58, %v791_v50 }
 0x9ed   :  { %795 = vrot.lane.b32.xlu0 %v793_v10, %s2844_s1 }
 0xa5b   :  { %v926_v14 = vpop.permute.xlu0 %925 }
 0xa5c   :  { %v3115_v16 = vadd.f32 %v926_v14, %v911_v13  ;;  %v928_v17 = vpop.permute.xlu1 %927 }
 0xa5d   :  { %v3117_v18 = vadd.f32 %v928_v17, %v912_v15 }
 0xa5e   :  { %2694 = vtanh.f32 %v3115_v16 }
 0xa5f   :  { %2696 = vtanh.f32 %v3117_v18  ;;  %v796_v20 = vpop.permute.xlu0 %795 }
 0xa60   :  { %v3122_v21 = vadd.f32 %v796_v20, %v788_v19 }
 0xa62   :  { %2698 = vtanh.f32 %v3122_v21 }
 0xa6b   :  { %v2695_v62 = vpop.eup %2694 }
 0xa6c   :  { %v2697_v0 = vpop.eup %2696  ;;  %937 = vrot.lane.b32.xlu1 %v2695_v62, %s2843_s0 }
 0xa6d   :  { %939 = vrot.lane.b32.xlu0 %v2697_v0, %s2843_s0 }
 0xa6f   :  { %v2699_v22 = vpop.eup %2698 }
 0xa70   :  { %801 = vrot.lane.b32.xlu1 %v2699_v22, %s2843_s0 }
 0xade   :  { %v938_v23 = vpop.permute.xlu1 %937 }
 0xadf   :  { %v940_v24 = vpop.permute.xlu0 %939  ;;  %v943_v3 = vmul.f32 %v2691_v59, %v938_v23  ;;  %v1160_v23 = vrot.slane %v3115_v16, 7 }
 0xae0   :  { %v944_v25 = vmul.f32 %v2693_v60, %v940_v24  ;;  %v1161_v24 = vrot.slane %v3117_v18, 7 }
 0xae1   :  { %v1058_v46 = vrot.slane %v943_v3, 3 }
 0xae2   :  { %v947_v26 = vrot.slane %v944_v25, 7  ;;  %v802_v28 = vpop.permute.xlu1 %801  ;;  %v1059_v42 = vrot.slane %v944_v25, 2 }
 0xae3   :  { %v804_v29 = vmul.f32 %v2689_v58, %v802_v28 }
 0xae4   :  { %v949_v48 = vsel %vm948_vm7, %v947_v26, %v943_v3  ;;  %v1060_v27 = vsel %vm196_vm2, %v1059_v42, %v1058_v46 }
 0xae5   :  { %v954_v49 = vrot.slane %v804_v29, 5  ;;  %950 = vrot.lane.b32.xlu0 %v949_v48, %s2844_s1 }
 0xae7   :  { %955 = vrot.lane.b32.xlu1 %v954_v49, %s2843_s0 }
 0xae9   :  { %1061 = vrot.lane.b32.xlu0 %v1060_v27, %s2844_s1 }
 0xb57   :  { %v951_v30 = vpop.permute.xlu0 %950 }
 0xb59   :  { %v956_v51 = vpop.permute.xlu1 %955 }
 0xb5a   :  { %v958_v52 = vsel %vm201_vm3, %v951_v30, %v956_v51 }
 0xb5b   :  { %v960_v53 = vrot.slane %v958_v52, 3  ;;  %v1062_v55 = vpop.permute.xlu0 %1061 }
 0xb5c   :  { %2504 = vmatmul.mubr.msk.f32.vlgmr.msra.gmra.mxu1 %vm201_vm3, %v1062_v55 }
 0xb5d   :  { %2493 = vmatmul.mubr.msk.f32.vlgmr.msra.gmra.mxu0 %vm207_vm4, %v960_v53  ;;  %2507 = vmatpush3.msra.mxu1 %v2894_v31 }
 0xb5e   :  { %2508 = vmatprep.subr.mxu1 %v2845_v32  ;;  %2526 = vmatpush3.msra.mxu0 %v2900_v34 }
 0xb5f   :  { %2509 = vmatpush3.msra.mxu1 %v2897_v33  ;;  %2527 = vmatprep.subr.mxu0 %v2845_v32 }
 0xb60   :  { %2510 = vmatprep.subr.mxu1 %v2845_v32  ;;  %2528 = vmatpush3.msra.mxu0 %v2904_v35 }
 0xb61   :  { %2511 = vmatpush3.msra.mxu1 %v2907_v36  ;;  %2529 = vmatprep.subr.mxu0 %v2845_v32 }
 0xb62   :  { %2512 = vmatprep.subr.mxu1 %v2845_v32  ;;  %2530 = vmatpush3.msra.mxu0 %v2912_v37 }
 0xb63   :  { %2513 = vmatpush3.msra.mxu1 %v2915_v39  ;;  %2531 = vmatprep.subr.mxu0 %v2845_v32 }
 0xb64   :  { %2514 = vmatprep.subr.mxu1 %v2845_v32  ;;  %2532 = vmatpush3.msra.mxu0 %v2920_v40 }
 0xb65   :  { %2515 = vmatpush3.msra.mxu1 %v2923_v41  ;;  %2533 = vmatprep.mubr.msk.f32.mxu0 %vm2846_vm1, %v2845_v32 }
 0xb66   :  { %2516 = vmatprep.subr.mxu1 %v2845_v32  ;;  %2522 = vmatprep.mubr.msk.f32.mxu1 %vm2846_vm1, %v2845_v32 }
 0xb67   :  { %2517 = vmatpush3.msra.mxu1 %v2929_v43  ;;  %2536 = vmatprep.subr.mxu0 %v2845_v32 }
 0xb68   :  { %2518 = vmatprep.subr.mxu1 %v2845_v32 }
 0xb69   :  { %2519 = vmatpush3.msra.mxu1 %v2935_v44 }
 0xb6a   :  { %2520 = vmatprep.subr.mxu1 %v2845_v32 }
 0xb6b   :  { %2521 = vmatpush3.msra.mxu1 %v2946_v45 }
 0xb6c   :  { %2555 = vmatprep.subr.mxu1 %v2845_v32 }
 0xc1c   :  { %v1131_v31 = vpop.f32.mrf.mxu1 }
 0xc1d   :  { %v1136_v33 = vrot.slane %v1131_v31, 4  ;;  %v1137_v34 = vrot.slane %v1131_v31, 5  ;;  %v1029_v35 = vpop.f32.mrf.mxu0 }
 0xc1e   :  { %v1030_v36 = vadd.f32 %v2985_v54, %v1029_v35  ;;  %v2505_v56 = vpop.f32.mrf.mxu1 }
 0xc1f   :  { %v1140_v57 = vadd.f32 %v1136_v33, %v2871_v9  ;;  %v1141_v58 = vadd.f32 %v1137_v34, %v2868_v6  ;;  %v2494_v59 = vpop.f32.mrf.mxu0 }
 0xc20   :  { %v2224_v60 = vmul.f32 -1.442695, %v1030_v36 }
 0xc21   :  { %v2227_v61 = vmul.f32 -1.442695, %v1140_v57  ;;  %v2228_v63 = vmul.f32 -1.442695, %v1141_v58 }
 0xc22   :  { %2700 = vpow2.f32 %v2224_v60 }
 0xc23   :  { %2702 = vpow2.f32 %v2227_v61 }
 0xc24   :  { %2704 = vpow2.f32 %v2228_v63  ;;  %v3194_v63 = vld [vmem:[#allocation4 + $0x70] sm:$0xff] }
 0xc2f   :  { %v2701_v1 = vpop.eup %2700 }
 0xc30   :  { %v2703_v2 = vpop.eup %2702  ;;  %v1036_v38 = vadd.f32 1.0, %v2701_v1  ;;  %v3198_v1 = vld [vmem:[#allocation4 + $0x28] sm:$0xff] }
 0xc31   :  { %v2705_v47 = vpop.eup %2704  ;;  %v1148_v4 = vadd.f32 1.0, %v2703_v2  ;;  %v3201_v2 = vld [vmem:[#allocation4 + $0x68] sm:$0xff] }
 0xc32   :  { %v1149_v5 = vadd.f32 1.0, %v2705_v47  ;;  %2706 = vrcp.f32 %v1036_v38  ;;  %v3206_v38 = vld [vmem:[#allocation4 + $0x20] sm:$0xff] }
 0xc33   :  { %2708 = vrcp.f32 %v1148_v4  ;;  %v3209_v47 = vld [vmem:[#allocation4 + $0x60] sm:$0xff] }
 0xc34   :  { %2710 = vrcp.f32 %v1149_v5 }
 0xc3f   :  { %v2707_v7 = vpop.eup %2706 }
 0xc40   :  { %v2709_v8 = vpop.eup %2708  ;;  %v1039_v13 = vmul.f32 2.0, %v2707_v7  ;;  %v1041_v46 = vmul.f32 %v2707_v7, %v3122_v21 }
 0xc41   :  { %v2711_v50 = vpop.eup %2710  ;;  %v1154_v10 = vmul.f32 2.0, %v2709_v8  ;;  %v1164_v25 = vmul.f32 %v2709_v8, %v1160_v23 }
 0xc42   :  { %v1155_v11 = vmul.f32 2.0, %v2711_v50  ;;  %v2225_v15 = vadd.f32 -1.0, %v1039_v13  ;;  %v1165_v26 = vmul.f32 %v2711_v50, %v1161_v24 }
 0xc43   :  { %v2229_v12 = vadd.f32 -1.0, %v1154_v10 }
 0xc44   :  { %v2230_v14 = vadd.f32 -1.0, %v1155_v11 }
 0xc45   :  { %1168 = vrot.lane.b32.xlu1 %v2229_v12, %s2843_s0 }
 0xc46   :  { %1170 = vrot.lane.b32.xlu0 %v2230_v14, %s2843_s0 }
 0xc49   :  { %1043 = vrot.lane.b32.xlu1 %v2225_v15, %s2843_s0 }
 0xcb7   :  { %v1169_v17 = vpop.permute.xlu1 %1168 }
 0xcb8   :  { %v1171_v19 = vpop.permute.xlu0 %1170  ;;  %v1174_v20 = vmul.f32 %v2709_v8, %v1169_v17 }
 0xcb9   :  { %v1175_v62 = vmul.f32 %v2711_v50, %v1171_v19 }
 0xcba   :  { %1178 = vrot.lane.b32.xlu0 %v1174_v20, %s2844_s1 }
 0xcbb   :  { %1180 = vrot.lane.b32.xlu1 %v1175_v62, %s2844_s1  ;;  %v1044_v0 = vpop.permute.xlu1 %1043 }
 0xcbc   :  { %v1046_v22 = vmul.f32 %v2707_v7, %v1044_v0 }
 0xcbe   :  { %1048 = vrot.lane.b32.xlu0 %v1046_v22, %s2844_s1 }
 0xd2c   :  { %v1179_v3 = vpop.permute.xlu0 %1178 }
 0xd2d   :  { %v3174_v28 = vadd.f32 %v1179_v3, %v1164_v25  ;;  %v1181_v29 = vpop.permute.xlu1 %1180 }
 0xd2e   :  { %v3176_v42 = vadd.f32 %v1181_v29, %v1165_v26 }
 0xd2f   :  { %2712 = vtanh.f32 %v3174_v28 }
 0xd30   :  { %2714 = vtanh.f32 %v3176_v42  ;;  %v1049_v48 = vpop.permute.xlu0 %1048 }
 0xd31   :  { %v3181_v49 = vadd.f32 %v1049_v48, %v1041_v46 }
 0xd33   :  { %2716 = vtanh.f32 %v3181_v49 }
 0xd3c   :  { %v2713_v16 = vpop.eup %2712 }
 0xd3d   :  { %v2715_v18 = vpop.eup %2714  ;;  %1190 = vrot.lane.b32.xlu1 %v2713_v16, %s2843_s0  ;;  %v1413_v16 = vrot.slane %v3174_v28, 7 }
 0xd3e   :  { %1192 = vrot.lane.b32.xlu0 %v2715_v18, %s2843_s0  ;;  %v1414_v18 = vrot.slane %v3176_v42, 7 }
 0xd40   :  { %v2717_v27 = vpop.eup %2716 }
 0xd41   :  { %1054 = vrot.lane.b32.xlu1 %v2717_v27, %s2843_s0 }
 0xdaf   :  { %v1191_v30 = vpop.permute.xlu1 %1190 }
 0xdb0   :  { %v1193_v51 = vpop.permute.xlu0 %1192  ;;  %v1196_v21 = vmul.f32 %v2709_v8, %v1191_v30 }
 0xdb1   :  { %v1197_v52 = vmul.f32 %v2711_v50, %v1193_v51 }
 0xdb2   :  { %v1311_v34 = vrot.slane %v1196_v21, 4 }
 0xdb3   :  { %v1200_v53 = vrot.slane %v1197_v52, 7  ;;  %v1055_v55 = vpop.permute.xlu1 %1054  ;;  %v1312_v33 = vrot.slane %v1197_v52, 3 }
 0xdb4   :  { %v1057_v31 = vmul.f32 %v2707_v7, %v1055_v55 }
 0xdb5   :  { %v1202_v35 = vsel %vm1201_vm8, %v1200_v53, %v1196_v21  ;;  %v1313_v56 = vsel %vm196_vm2, %v1312_v33, %v1311_v34 }
 0xdb6   :  { %v1207_v36 = vrot.slane %v1057_v31, 4  ;;  %1203 = vrot.lane.b32.xlu0 %v1202_v35, %s2844_s1 }
 0xdb8   :  { %1208 = vrot.lane.b32.xlu1 %v1207_v36, %s2843_s0 }
 0xdba   :  { %1314 = vrot.lane.b32.xlu0 %v1313_v56, %s2844_s1 }
 0xe28   :  { %v1204_v57 = vpop.permute.xlu0 %1203 }
 0xe2a   :  { %v1209_v58 = vpop.permute.xlu1 %1208 }
 0xe2b   :  { %v1211_v59 = vsel %vm201_vm3, %v1204_v57, %v1209_v58 }
 0xe2c   :  { %v1213_v60 = vrot.slane %v1211_v59, 4  ;;  %v1315_v61 = vpop.permute.xlu0 %1314 }
 0xe2d   :  { %2534 = vmatmul.mubr.msk.f32.vlgmr.msra.gmra.mxu0 %vm201_vm3, %v1315_v61 }
 0xe2e   :  { %2523 = vmatmul.mubr.msk.f32.vlgmr.msra.gmra.mxu1 %vm207_vm4, %v1213_v60  ;;  %2537 = vmatpush3.msra.mxu0 %v3194_v63 }
 0xe2f   :  { %2538 = vmatprep.subr.mxu0 %v2845_v32  ;;  %2556 = vmatpush3.msra.mxu1 %v3198_v1 }
 0xe30   :  { %2539 = vmatpush3.msra.mxu0 %v3201_v2  ;;  %2557 = vmatprep.subr.mxu1 %v2845_v32 }
 0xe31   :  { %2540 = vmatprep.subr.mxu0 %v2845_v32  ;;  %2558 = vmatpush3.msra.mxu1 %v3206_v38 }
 0xe32   :  { %2541 = vmatpush3.msra.mxu0 %v3209_v47  ;;  %2559 = vmatprep.subr.mxu1 %v2845_v32 }
 0xe33   :  { %2542 = vmatprep.subr.mxu0 %v2845_v32  ;;  %2560 = vmatpush3.msra.mxu1 %v2912_v37 }
 0xe34   :  { %2543 = vmatpush3.msra.mxu0 %v2915_v39  ;;  %2561 = vmatprep.subr.mxu1 %v2845_v32 }
 0xe35   :  { %2544 = vmatprep.subr.mxu0 %v2845_v32  ;;  %2562 = vmatpush3.msra.mxu1 %v2920_v40 }
 0xe36   :  { %2545 = vmatpush3.msra.mxu0 %v2923_v41  ;;  %2563 = vmatprep.mubr.msk.f32.mxu1 %vm2846_vm1, %v2845_v32 }
 0xe37   :  { %2546 = vmatprep.subr.mxu0 %v2845_v32  ;;  %2552 = vmatprep.mubr.msk.f32.mxu0 %vm2846_vm1, %v2845_v32 }
 0xe38   :  { %2547 = vmatpush3.msra.mxu0 %v2929_v43  ;;  %2566 = vmatprep.subr.mxu1 %v2845_v32 }
 0xe39   :  { %2548 = vmatprep.subr.mxu0 %v2845_v32 }
 0xe3a   :  { %2549 = vmatpush3.msra.mxu0 %v2935_v44 }
 0xe3b   :  { %2550 = vmatprep.subr.mxu0 %v2845_v32 }
 0xe3c   :  { %2551 = vmatpush3.msra.mxu0 %v2946_v45 }
 0xe3d   :  { %2585 = vmatprep.subr.mxu0 %v2845_v32 }
 0xeed   :  { %v1384_v37 = vpop.f32.mrf.mxu0 }
 0xeee   :  { %v1389_v39 = vrot.slane %v1384_v37, 3  ;;  %v1390_v40 = vrot.slane %v1384_v37, 4  ;;  %v1282_v41 = vpop.f32.mrf.mxu1 }
 0xeef   :  { %v1283_v4 = vadd.f32 %v2985_v54, %v1282_v41  ;;  %v2535_v5 = vpop.f32.mrf.mxu0 }
 0xef0   :  { %v1393_v43 = vadd.f32 %v1389_v39, %v2871_v9  ;;  %v1394_v7 = vadd.f32 %v1390_v40, %v2868_v6  ;;  %v2524_v8 = vpop.f32.mrf.mxu1 }
 0xef1   :  { %v2232_v50 = vmul.f32 -1.442695, %v1283_v4  ;;  %v2787_v8 = vld [vmem:[#allocation4 + $0x18] sm:$0xff] }
 0xef2   :  { %v2235_v44 = vmul.f32 -1.442695, %v1393_v43  ;;  %v2236_v10 = vmul.f32 -1.442695, %v1394_v7 }
 0xef3   :  { %2718 = vpow2.f32 %v2232_v50  ;;  %v3273_v50 = vld [vmem:[#allocation4 + $0x58] sm:$0xff] }
 0xef4   :  { %2720 = vpow2.f32 %v2235_v44  ;;  %v3286_v44 = vld [vmem:[#allocation4 + $0x48] sm:$0xff] }
 0xef5   :  { %2722 = vpow2.f32 %v2236_v10  ;;  %v3291_v10 = vld [vmem:[#allocation4 + $0x40] sm:$0xff] }
 0xf00   :  { %v2719_v45 = vpop.eup %2718 }
 0xf01   :  { %v2721_v11 = vpop.eup %2720  ;;  %v1289_v12 = vadd.f32 1.0, %v2719_v45  ;;  %v3295_v45 = vld [vmem:[#allocation4 + $0x38] sm:$0xff] }
 0xf02   :  { %v2723_v13 = vpop.eup %2722  ;;  %v1401_v14 = vadd.f32 1.0, %v2721_v11 }
 0xf03   :  { %v1402_v15 = vadd.f32 1.0, %v2723_v13  ;;  %2724 = vrcp.f32 %v1289_v12 }
 0xf04   :  { %2726 = vrcp.f32 %v1401_v14 }
 0xf05   :  { %2728 = vrcp.f32 %v1402_v15  ;;  %v3299_v15 = vld [vmem:[#allocation4 + $0x78] ss:$0 sm:$0xff] }
 0xf10   :  { %v2725_v54 = vpop.eup %2724 }
 0xf11   :  { %v2727_v17 = vpop.eup %2726  ;;  %v1292_v22 = vmul.f32 2.0, %v2725_v54  ;;  %v1294_v55 = vmul.f32 %v2725_v54, %v3181_v49 }
 0xf12   :  { %v2729_v19 = vpop.eup %2728  ;;  %v1407_v20 = vmul.f32 2.0, %v2727_v17  ;;  %v1417_v27 = vmul.f32 %v2727_v17, %v1413_v16 }
 0xf13   :  { %v1408_v62 = vmul.f32 2.0, %v2729_v19  ;;  %v2233_v24 = vadd.f32 -1.0, %v1292_v22  ;;  %v1418_v51 = vmul.f32 %v2729_v19, %v1414_v18 }
 0xf14   :  { %v2237_v0 = vadd.f32 -1.0, %v1407_v20 }
 0xf15   :  { %v2238_v23 = vadd.f32 -1.0, %v1408_v62 }
 0xf16   :  { %1421 = vrot.lane.b32.xlu1 %v2237_v0, %s2843_s0 }
 0xf17   :  { %1423 = vrot.lane.b32.xlu0 %v2238_v23, %s2843_s0 }
 0xf1a   :  { %1296 = vrot.lane.b32.xlu1 %v2233_v24, %s2843_s0 }
 0xf88   :  { %v1422_v25 = vpop.permute.xlu1 %1421 }
 0xf89   :  { %v1424_v3 = vpop.permute.xlu0 %1423  ;;  %v1427_v26 = vmul.f32 %v2727_v17, %v1422_v25 }
 0xf8a   :  { %v1428_v29 = vmul.f32 %v2729_v19, %v1424_v3 }
 0xf8b   :  { %1431 = vrot.lane.b32.xlu0 %v1427_v26, %s2844_s1 }
 0xf8c   :  { %1433 = vrot.lane.b32.xlu1 %v1428_v29, %s2844_s1  ;;  %v1297_v46 = vpop.permute.xlu1 %1296 }
 0xf8d   :  { %v1299_v48 = vmul.f32 %v2725_v54, %v1297_v46 }
 0xf8f   :  { %1301 = vrot.lane.b32.xlu0 %v1299_v48, %s2844_s1 }
 0xffd   :  { %v1432_v30 = vpop.permute.xlu0 %1431 }
 0xffe   :  { %v3243_v52 = vadd.f32 %v1432_v30, %v1417_v27  ;;  %v1434_v21 = vpop.permute.xlu1 %1433 }
 0xfff   :  { %v3245_v53 = vadd.f32 %v1434_v21, %v1418_v51 }
0x1000   :  { %2730 = vtanh.f32 %v3243_v52 }
0x1001   :  { %2732 = vtanh.f32 %v3245_v53  ;;  %v1302_v31 = vpop.permute.xlu0 %1301 }
0x1002   :  { %v3250_v33 = vadd.f32 %v1302_v31, %v1294_v55 }
0x1004   :  { %2734 = vtanh.f32 %v3250_v33 }
0x100d   :  { %v2731_v28 = vpop.eup %2730 }
0x100e   :  { %v2733_v42 = vpop.eup %2732  ;;  %1443 = vrot.lane.b32.xlu1 %v2731_v28, %s2843_s0 }
0x100f   :  { %1445 = vrot.lane.b32.xlu0 %v2733_v42, %s2843_s0 }
0x1011   :  { %v2735_v34 = vpop.eup %2734 }
0x1012   :  { %1307 = vrot.lane.b32.xlu1 %v2735_v34, %s2843_s0 }
0x1080   :  { %v1444_v35 = vpop.permute.xlu1 %1443 }
0x1081   :  { %v1446_v36 = vpop.permute.xlu0 %1445  ;;  %v1449_v49 = vmul.f32 %v2727_v17, %v1444_v35 }
0x1082   :  { %v1450_v56 = vmul.f32 %v2729_v19, %v1446_v36 }
0x1083   :  { %v1564_v61 = vrot.slane %v1449_v49, 5 }
0x1084   :  { %v1453_v57 = vrot.slane %v1450_v56, 7  ;;  %v1308_v58 = vpop.permute.xlu1 %1307  ;;  %v1565_v60 = vrot.slane %v1450_v56, 4 }
0x1085   :  { %v1310_v59 = vmul.f32 %v2725_v54, %v1308_v58 }
0x1086   :  { %v1455_v37 = vsel %vm1454_vm9, %v1453_v57, %v1449_v49  ;;  %v1566_v40 = vsel %vm196_vm2, %v1565_v60, %v1564_v61  ;;  %v1667_v49 = vrot.slane %v3245_v53, 7 }
0x1087   :  { %v1460_v39 = vrot.slane %v1310_v59, 3  ;;  %1456 = vrot.lane.b32.xlu0 %v1455_v37, %s2844_s1  ;;  %v1666_v37 = vrot.slane %v3243_v52, 7 }
0x1089   :  { %1461 = vrot.lane.b32.xlu1 %v1460_v39, %s2843_s0 }
0x108b   :  { %1567 = vrot.lane.b32.xlu0 %v1566_v40, %s2844_s1 }
0x10f9   :  { %v1457_v41 = vpop.permute.xlu0 %1456 }
0x10fb   :  { %v1462_v4 = vpop.permute.xlu1 %1461 }
0x10fc   :  { %v1464_v5 = vsel %vm201_vm3, %v1457_v41, %v1462_v4 }
0x10fd   :  { %v1466_v43 = vrot.slane %v1464_v5, 5  ;;  %v1568_v7 = vpop.permute.xlu0 %1567 }
0x10fe   :  { %2564 = vmatmul.mubr.msk.f32.vlgmr.msra.gmra.mxu1 %vm201_vm3, %v1568_v7 }
0x10ff   :  { %2553 = vmatmul.mubr.msk.f32.vlgmr.msra.gmra.mxu0 %vm207_vm4, %v1466_v43  ;;  %2567 = vmatpush3.msra.mxu1 %v3194_v63 }
0x1100   :  { %2568 = vmatprep.subr.mxu1 %v2845_v32  ;;  %2586 = vmatpush3.msra.mxu0 %v3198_v1  ;;  %v3280_v1 = vld [vmem:[#allocation4 + $0x50] sm:$0xff] }
0x1101   :  { %2569 = vmatpush3.msra.mxu1 %v3201_v2  ;;  %2587 = vmatprep.subr.mxu0 %v2845_v32 }
0x1102   :  { %2570 = vmatprep.subr.mxu1 %v2845_v32  ;;  %2588 = vmatpush3.msra.mxu0 %v3206_v38  ;;  %v2790_v38 = vld [vmem:[#allocation4 + $0x10] sm:$0xff] }
0x1103   :  { %2571 = vmatpush3.msra.mxu1 %v3209_v47  ;;  %2589 = vmatprep.subr.mxu0 %v2845_v32 }
0x1104   :  { %2572 = vmatprep.subr.mxu1 %v2845_v32  ;;  %2590 = vmatpush3.msra.mxu0 %v2787_v8 }
0x1105   :  { %2573 = vmatpush3.msra.mxu1 %v3273_v50  ;;  %2582 = vmatprep.mubr.msk.f32.mxu1 %vm2846_vm1, %v2845_v32 }
0x1106   :  { %2574 = vmatprep.subr.mxu1 %v2845_v32  ;;  %2591 = vmatprep.subr.mxu0 %v2845_v32 }
0x1107   :  { %2575 = vmatpush3.msra.mxu1 %v3280_v1  ;;  %2592 = vmatpush3.msra.mxu0 %v2790_v38 }
0x1108   :  { %2576 = vmatprep.subr.mxu1 %v2845_v32  ;;  %2593 = vmatprep.mubr.msk.f32.mxu0 %vm2846_vm1, %v2845_v32 }
0x1109   :  { %2577 = vmatpush3.msra.mxu1 %v3286_v44  ;;  %2596 = vmatprep.subr.mxu0 %v2845_v32 }
0x110a   :  { %2578 = vmatprep.subr.mxu1 %v2845_v32 }
0x110b   :  { %2579 = vmatpush3.msra.mxu1 %v3291_v10 }
0x110c   :  { %2580 = vmatprep.subr.mxu1 %v2845_v32 }
0x110d   :  { %2581 = vmatpush3.msra.mxu1 %v3295_v45 }
0x110e   :  { %2615 = vmatprep.subr.mxu1 %v2845_v32 }
0x11be   :  { %v1637_v11 = vpop.f32.mrf.mxu1 }
0x11bf   :  { %v1642_v12 = vrot.slane %v1637_v11, 2  ;;  %v1643_v13 = vrot.slane %v1637_v11, 3  ;;  %v1535_v14 = vpop.f32.mrf.mxu0 }
0x11c0   :  { %v1536_v54 = vadd.f32 %v3299_v15, %v1535_v14  ;;  %v2565_v17 = vpop.f32.mrf.mxu1 }
0x11c1   :  { %v1646_v19 = vadd.f32 %v1642_v12, %v2871_v9  ;;  %v1647_v20 = vadd.f32 %v1643_v13, %v2868_v6  ;;  %v2554_v62 = vpop.f32.mrf.mxu0 }
0x11c2   :  { %v2240_v0 = vmul.f32 -1.442695, %v1536_v54 }
0x11c3   :  { %v2243_v22 = vmul.f32 -1.442695, %v1646_v19  ;;  %v2244_v23 = vmul.f32 -1.442695, %v1647_v20 }
0x11c4   :  { %2736 = vpow2.f32 %v2240_v0 }
0x11c5   :  { %2738 = vpow2.f32 %v2243_v22 }
0x11c6   :  { %2740 = vpow2.f32 %v2244_v23 }
0x11d1   :  { %v2737_v24 = vpop.eup %2736 }
0x11d2   :  { %v2739_v25 = vpop.eup %2738  ;;  %v1542_v3 = vadd.f32 1.0, %v2737_v24 }
0x11d3   :  { %v2741_v26 = vpop.eup %2740  ;;  %v1654_v29 = vadd.f32 1.0, %v2739_v25 }
0x11d4   :  { %v1655_v46 = vadd.f32 1.0, %v2741_v26  ;;  %2742 = vrcp.f32 %v1542_v3 }
0x11d5   :  { %2744 = vrcp.f32 %v1654_v29 }
0x11d6   :  { %2746 = vrcp.f32 %v1655_v46 }
0x11e1   :  { %v2743_v48 = vpop.eup %2742 }
0x11e2   :  { %v2745_v16 = vpop.eup %2744  ;;  %v1545_v18 = vmul.f32 2.0, %v2743_v48  ;;  %v1547_v57 = vmul.f32 %v2743_v48, %v3250_v33 }
0x11e3   :  { %v2747_v27 = vpop.eup %2746  ;;  %v1660_v55 = vmul.f32 2.0, %v2745_v16  ;;  %v1670_v40 = vmul.f32 %v2745_v16, %v1666_v37 }
0x11e4   :  { %v2241_v30 = vadd.f32 -1.0, %v1545_v18  ;;  %v1661_v51 = vmul.f32 2.0, %v2747_v27  ;;  %v1671_v59 = vmul.f32 %v2747_v27, %v1667_v49 }
0x11e5   :  { %v2245_v31 = vadd.f32 -1.0, %v1660_v55 }
0x11e6   :  { %1549 = vrot.lane.b32.xlu0 %v2241_v30, %s2843_s0  ;;  %v2246_v21 = vadd.f32 -1.0, %v1661_v51 }
0x11e8   :  { %1676 = vrot.lane.b32.xlu1 %v2246_v21, %s2843_s0 }
0x11ec   :  { %1674 = vrot.lane.b32.xlu1 %v2245_v31, %s2843_s0 }
0x1258   :  { %v1550_v28 = vpop.permute.xlu0 %1549 }
0x1259   :  { %v1552_v42 = vmul.f32 %v2743_v48, %v1550_v28 }
0x125a   :  { %v1677_v34 = vpop.permute.xlu1 %1676 }
0x125b   :  { %v1681_v35 = vmul.f32 %v2747_v27, %v1677_v34  ;;  %1554 = vrot.lane.b32.xlu1 %v1552_v42, %s2844_s1 }
0x125d   :  { %1686 = vrot.lane.b32.xlu0 %v1681_v35, %s2844_s1 }
0x125e   :  { %v1675_v36 = vpop.permute.xlu1 %1674 }
0x125f   :  { %v1680_v56 = vmul.f32 %v2745_v16, %v1675_v36 }
0x1261   :  { %1684 = vrot.lane.b32.xlu0 %v1680_v56, %s2844_s1 }
0x12cd   :  { %v1555_v58 = vpop.permute.xlu1 %1554 }
0x12ce   :  { %v3312_v60 = vadd.f32 %v1555_v58, %v1547_v57 }
0x12cf   :  { %v1687_v61 = vpop.permute.xlu0 %1686 }
0x12d0   :  { %v3315_v39 = vadd.f32 %v1687_v61, %v1671_v59  ;;  %2748 = vtanh.f32 %v3312_v60 }
0x12d2   :  { %2750 = vtanh.f32 %v3315_v39  ;;  %v1920_v61 = vrot.slane %v3315_v39, 7 }
0x12d3   :  { %v1685_v41 = vpop.permute.xlu0 %1684 }
0x12d4   :  { %v3319_v4 = vadd.f32 %v1685_v41, %v1670_v40 }
0x12d6   :  { %2752 = vtanh.f32 %v3319_v4  ;;  %v1919_v37 = vrot.slane %v3319_v4, 7 }
0x12dd   :  { %v2749_v53 = vpop.eup %2748 }
0x12de   :  { %1560 = vrot.lane.b32.xlu0 %v2749_v53, %s2843_s0 }
0x12df   :  { %v2751_v33 = vpop.eup %2750 }
0x12e0   :  { %1698 = vrot.lane.b32.xlu1 %v2751_v33, %s2843_s0 }
0x12e3   :  { %v2753_v5 = vpop.eup %2752 }
0x12e4   :  { %1696 = vrot.lane.b32.xlu1 %v2753_v5, %s2843_s0 }
0x1350   :  { %v1561_v52 = vpop.permute.xlu0 %1560 }
0x1351   :  { %v1563_v43 = vmul.f32 %v2743_v48, %v1561_v52 }
0x1352   :  { %v1699_v7 = vpop.permute.xlu1 %1698 }
0x1353   :  { %v1713_v8 = vrot.slane %v1563_v43, 2  ;;  %v1703_v38 = vmul.f32 %v2747_v27, %v1699_v7 }
0x1355   :  { %1714 = vrot.lane.b32.xlu1 %v1713_v8, %s2843_s0  ;;  %v1706_v12 = vrot.slane %v1703_v38, 7  ;;  %v1818_v17 = vrot.slane %v1703_v38, 5 }
0x1356   :  { %v1697_v11 = vpop.permute.xlu1 %1696 }
0x1357   :  { %v1702_v13 = vmul.f32 %v2745_v16, %v1697_v11 }
0x1359   :  { %v1817_v14 = vrot.slane %v1702_v13, 6  ;;  %v1708_v54 = vsel %vm1707_vm10, %v1706_v12, %v1702_v13 }
0x135a   :  { %1709 = vrot.lane.b32.xlu0 %v1708_v54, %s2844_s1 }
0x135b   :  { %v1819_v19 = vsel %vm196_vm2, %v1818_v17, %v1817_v14 }
0x135e   :  { %1820 = vrot.lane.b32.xlu0 %v1819_v19, %s2844_s1 }
0x13c7   :  { %v1715_v20 = vpop.permute.xlu1 %1714 }
0x13cc   :  { %v1710_v62 = vpop.permute.xlu0 %1709 }
0x13cd   :  { %v1717_v0 = vsel %vm201_vm3, %v1710_v62, %v1715_v20 }
0x13ce   :  { %v1719_v22 = vrot.slane %v1717_v0, 6 }
0x13d0   :  { %v1821_v23 = vpop.permute.xlu0 %1820  ;;  %2583 = vmatmul.mubr.msk.f32.vlgmr.msra.gmra.mxu1 %vm207_vm4, %v1719_v22 }
0x13d1   :  { %2594 = vmatmul.mubr.msk.f32.vlgmr.msra.gmra.mxu0 %vm201_vm3, %v1821_v23  ;;  %2623 = vmatprep.mubr.msk.f32.mxu1 %vm2846_vm1, %v2845_v32 }
0x13d2   :  { %2597 = vmatpush3.msra.mxu0 %v3194_v63  ;;  %2612 = vmatprep.mubr.msk.f32.mxu0 %vm2846_vm1, %v2845_v32 }
0x13d3   :  { %2598 = vmatprep.subr.mxu0 %v2845_v32 }
0x13d4   :  { %2599 = vmatpush3.msra.mxu0 %v3201_v2 }
0x13d5   :  { %2600 = vmatprep.subr.mxu0 %v2845_v32 }
0x13d6   :  { %2601 = vmatpush3.msra.mxu0 %v3209_v47 }
0x13d7   :  { %2602 = vmatprep.subr.mxu0 %v2845_v32 }
0x13d8   :  { %2603 = vmatpush3.msra.mxu0 %v3273_v50 }
0x13d9   :  { %2604 = vmatprep.subr.mxu0 %v2845_v32 }
0x13da   :  { %2605 = vmatpush3.msra.mxu0 %v3280_v1 }
0x13db   :  { %2606 = vmatprep.subr.mxu0 %v2845_v32 }
0x13dc   :  { %2607 = vmatpush3.msra.mxu0 %v3286_v44 }
0x13dd   :  { %2608 = vmatprep.subr.mxu0 %v2845_v32 }
0x13de   :  { %2609 = vmatpush3.msra.mxu0 %v3291_v10 }
0x13df   :  { %2610 = vmatprep.subr.mxu0 %v2845_v32 }
0x13e0   :  { %2611 = vmatpush3.msra.mxu0 %v3295_v45 }
0x1490   :  { %v1788_v63 = vpop.f32.mrf.mxu1 }
0x1491   :  { %v1789_v2 = vadd.f32 %v3299_v15, %v1788_v63  ;;  %v1890_v47 = vpop.f32.mrf.mxu0 }
0x1492   :  { %v1895_v50 = vrot.slane %v1890_v47, 1  ;;  %v1896_v24 = vrot.slane %v1890_v47, 2  ;;  %v2584_v25 = vpop.f32.mrf.mxu1 }
0x1493   :  { %v2248_v1 = vmul.f32 -1.442695, %v1789_v2  ;;  %v2595_v3 = vpop.f32.mrf.mxu0 }
0x1494   :  { %v1899_v26 = vadd.f32 %v1895_v50, %v2871_v9  ;;  %v1900_v44 = vadd.f32 %v1896_v24, %v2868_v6 }
0x1495   :  { %2754 = vpow2.f32 %v2248_v1 }
0x1496   :  { %v2251_v29 = vmul.f32 -1.442695, %v1899_v26  ;;  %v2252_v10 = vmul.f32 -1.442695, %v1900_v44 }
0x1498   :  { %2756 = vpow2.f32 %v2251_v29 }
0x1499   :  { %2758 = vpow2.f32 %v2252_v10 }
0x14a2   :  { %v2755_v46 = vpop.eup %2754 }
0x14a3   :  { %v1795_v45 = vadd.f32 1.0, %v2755_v46 }
0x14a5   :  { %v2757_v48 = vpop.eup %2756  ;;  %2760 = vrcp.f32 %v1795_v45 }
0x14a6   :  { %v2759_v16 = vpop.eup %2758  ;;  %v1907_v18 = vadd.f32 1.0, %v2757_v48 }
0x14a7   :  { %v1908_v27 = vadd.f32 1.0, %v2759_v16  ;;  %v2078_v16 = vld [vmem:[#allocation4 + $0x90] sm:$0xff] }
0x14a8   :  { %2762 = vrcp.f32 %v1907_v18  ;;  %v2077_v18 = vld [vmem:[#allocation4 + $0x88] sm:$0xff] }
0x14a9   :  { %2764 = vrcp.f32 %v1908_v27  ;;  %v2076_v27 = vld [vmem:[#allocation4 + $0x80] sm:$0xff] }
0x14b2   :  { %v2761_v30 = vpop.eup %2760 }
0x14b3   :  { %v1798_v51 = vmul.f32 2.0, %v2761_v30  ;;  %v1800_v58 = vmul.f32 %v2761_v30, %v3312_v60 }
0x14b5   :  { %v2763_v21 = vpop.eup %2762  ;;  %v2249_v9 = vadd.f32 -1.0, %v1798_v51 }
0x14b6   :  { %v2765_v55 = vpop.eup %2764  ;;  %v1913_v6 = vmul.f32 2.0, %v2763_v21  ;;  %v1923_v53 = vmul.f32 %v2763_v21, %v1919_v37 }
0x14b7   :  { %1802 = vrot.lane.b32.xlu1 %v2249_v9, %s2843_s0  ;;  %v1914_v31 = vmul.f32 2.0, %v2765_v55  ;;  %v1924_v41 = vmul.f32 %v2765_v55, %v1920_v61 }
0x14b8   :  { %v2253_v28 = vadd.f32 -1.0, %v1913_v6 }
0x14b9   :  { %v2254_v42 = vadd.f32 -1.0, %v1914_v31 }
0x14bb   :  { %1929 = vrot.lane.b32.xlu0 %v2254_v42, %s2843_s0  ;;  %1927 = vrot.lane.b32.xlu1 %v2253_v28, %s2843_s0  ;;  %v2260_v42 = vld [vmem:[#allocation4 + $0xa8] ss:$0 sm:$0xff] }
0x1529   :  { %v1803_v34 = vpop.permute.xlu1 %1802 }
0x152a   :  { %v1805_v35 = vmul.f32 %v2761_v30, %v1803_v34 }
0x152c   :  { %1807 = vrot.lane.b32.xlu0 %v1805_v35, %s2844_s1 }
0x152d   :  { %v1930_v36 = vpop.permute.xlu0 %1929  ;;  %v1928_v56 = vpop.permute.xlu1 %1927 }
0x152e   :  { %v1934_v49 = vmul.f32 %v2765_v55, %v1930_v36  ;;  %v1933_v57 = vmul.f32 %v2763_v21, %v1928_v56  ;;  %v2261_v36 = vld [vmem:[#allocation4 + $0xb0] ss:$0 sm:$0xff] }
0x1530   :  { %1939 = vrot.lane.b32.xlu1 %v1934_v49, %s2844_s1  ;;  %1937 = vrot.lane.b32.xlu0 %v1933_v57, %s2844_s1 }
0x159e   :  { %v1808_v59 = vpop.permute.xlu0 %1807 }
0x159f   :  { %v1810_v40 = vadd.f32 %v1808_v59, %v1800_v58 }
0x15a1   :  { %2766 = vtanh.f32 %v1810_v40 }
0x15a2   :  { %v1940_v33 = vpop.permute.xlu1 %1939  ;;  %v1938_v5 = vpop.permute.xlu0 %1937 }
0x15a3   :  { %v1944_v52 = vadd.f32 %v1940_v33, %v1924_v41  ;;  %v1943_v43 = vadd.f32 %v1938_v5, %v1923_v53 }
0x15a5   :  { %2768 = vtanh.f32 %v1944_v52 }
0x15a6   :  { %2770 = vtanh.f32 %v1943_v43 }
0x15ae   :  { %v2767_v7 = vpop.eup %2766 }
0x15af   :  { %1813 = vrot.lane.b32.xlu1 %v2767_v7, %s2843_s0 }
0x15b2   :  { %v2769_v8 = vpop.eup %2768 }
0x15b3   :  { %v2771_v60 = vpop.eup %2770  ;;  %1951 = vrot.lane.b32.xlu0 %v2769_v8, %s2843_s0 }
0x15b4   :  { %1949 = vrot.lane.b32.xlu1 %v2771_v60, %s2843_s0 }
0x1621   :  { %v1814_v39 = vpop.permute.xlu1 %1813 }
0x1622   :  { %v1816_v12 = vmul.f32 %v2761_v30, %v1814_v39 }
0x1624   :  { %v1967_v54 = vrot.slane %v1816_v12, 1 }
0x1625   :  { %v1952_v4 = vpop.permute.xlu0 %1951 }
0x1626   :  { %v1956_v38 = vmul.f32 %v2765_v55, %v1952_v4  ;;  %v1950_v11 = vpop.permute.xlu1 %1949  ;;  %v2258_v55 = vld [vmem:[#allocation4 + $0xa0] ss:$0 sm:$0xff] }
0x1627   :  { %v1955_v13 = vmul.f32 %v2763_v21, %v1950_v11 }
0x1628   :  { %v1959_v14 = vrot.slane %v1956_v38, 7 }
0x1629   :  { %1960 = vrot.lane.b32.xlu0 %v1955_v13, %s2844_s1 }
0x162a   :  { %1962 = vrot.lane.b32.xlu1 %v1959_v14, %s2844_s1 }
0x162d   :  { %1968 = vrot.lane.b32.xlu0 %v1967_v54, %s2843_s0 }
0x169b   :  { %v1961_v17 = vpop.permute.xlu0 %1960 }
0x169c   :  { %v1963_v19 = vpop.permute.xlu1 %1962 }
0x169f   :  { %v1969_v20 = vpop.permute.xlu0 %1968 }
0x16a0   :  { %v1971_v62 = vsel %vm201_vm3, %v1961_v17, %v1969_v20  ;;  %v1972_v0 = vsel %vm201_vm3, %v1963_v19, %v1969_v20 }
0x16a1   :  { %v1976_v22 = vrot.slane %v1971_v62, 7  ;;  %v1977_v23 = vrot.slane %v1972_v0, 7 }
0x16a3   :  { %v1978_v63 = vsel %vm1975_vm11, %v1976_v22, %v1977_v23 }
0x16a4   :  { %2613 = vmatmul.mubr.msk.f32.vlgmr.msra.gmra.mxu0 %vm207_vm4, %v1978_v63 }
0x1764   :  { %v2047_v2 = vpop.f32.mrf.mxu0 }
0x1765   :  { %v2048_v47 = vadd.f32 %v3299_v15, %v2047_v2  ;;  %v2079_v15 = vld [vmem:[#allocation4 + $0x98] sm:$0xff] }
0x1766   :  { %v2614_v50 = vpop.f32.mrf.mxu0  ;;  %2616 = vmatpush3.msra.mxu1 %v2079_v15 }
0x1767   :  { %v2256_v24 = vmul.f32 -1.442695, %v2048_v47  ;;  %2617 = vmatprep.subr.mxu1 %v2845_v32 }
0x1768   :  { %2618 = vmatpush3.msra.mxu1 %v2078_v16 }
0x1769   :  { %2772 = vpow2.f32 %v2256_v24  ;;  %2619 = vmatprep.subr.mxu1 %v2845_v32 }
0x176a   :  { %2620 = vmatpush3.msra.mxu1 %v2077_v18 }
0x176b   :  { %2621 = vmatprep.subr.mxu1 %v2845_v32 }
0x176c   :  { %2622 = vmatpush3.msra.mxu1 %v2076_v27 }
0x1776   :  { %v2773_v25 = vpop.eup %2772 }
0x1777   :  { %v2054_v1 = vadd.f32 1.0, %v2773_v25 }
0x1779   :  { %2774 = vrcp.f32 %v2054_v1 }
0x1786   :  { %v2775_v3 = vpop.eup %2774 }
0x1787   :  { %v2057_v26 = vmul.f32 2.0, %v2775_v3  ;;  %v2059_v46 = vmul.f32 %v2775_v3, %v1810_v40 }
0x1789   :  { %v2257_v44 = vadd.f32 -1.0, %v2057_v26 }
0x178b   :  { %2061 = vrot.lane.b32.xlu1 %v2257_v44, %s2843_s0 }
0x17fd   :  { %v2062_v29 = vpop.permute.xlu1 %2061 }
0x17fe   :  { %v2064_v10 = vmul.f32 %v2775_v3, %v2062_v29 }
0x1800   :  { %2066 = vrot.lane.b32.xlu0 %v2064_v10, %s2844_s1 }
0x1872   :  { %v2067_v45 = vpop.permute.xlu0 %2066 }
0x1873   :  { %v2069_v48 = vadd.f32 %v2067_v45, %v2059_v46 }
0x1875   :  { %2776 = vtanh.f32 %v2069_v48 }
0x1882   :  { %v2777_v30 = vpop.eup %2776 }
0x1883   :  { %2072 = vrot.lane.b32.xlu1 %v2777_v30, %s2843_s0 }
0x18f5   :  { %v2073_v51 = vpop.permute.xlu1 %2072 }
0x18f6   :  { %v2075_v21 = vmul.f32 %v2775_v3, %v2073_v51 }
0x18f8   :  { %2088 = vrot.lane.b32.xlu0 %v2075_v21, %s2844_s1 }
0x196a   :  { %v2089_v9 = vpop.permute.xlu0 %2088 }
0x196b   :  { %2624 = vmatmul.mubr.msk.f32.vlgmr.msra.gmra.mxu1 %vm201_vm3, %v2089_v9 }
0x1a2b   :  { %v2158_v6 = vpop.f32.mrf.mxu1 }
0x1a2c   :  { %v2159_v31 = vadd.f32 %v2258_v55, %v2158_v6 }
0x1a2d   :  { %v2625_v28 = vpop.f32.mrf.mxu1 }
0x1a2e   :  { %v2162_v34 = vmax.f32 %v2159_v31, 0.0 }
0x1a30   :  { %v2167_v35 = vmul.f32 %v2260_v42, %v2162_v34 }
0x1a32   :  { %v2169_v32 = vsel %vm2168_vm12, %v2167_v35, 0.0 }
0x1a33   :  { %2170 = vadd.xlane.f32.xlu1 %v2169_v32 }
0x1abc   :  { %v2171_v56 = vpop.xlane.xlu1 %2170 }
0x1abd   :  { %v2176_v49 = vadd.f32 %v2261_v36, %v2171_v56 }
0x1abf   :  { %v2262_v57 = vmul.f32 -1.442695, %v2176_v49 }
0x1ac1   :  { %2778 = vpow2.f32 %v2262_v57 }
0x1ace   :  { %v2779_v58 = vpop.eup %2778 }
0x1acf   :  { %v2180_v59 = vadd.f32 1.0, %v2779_v58 }
0x1ad1   :  { %2780 = vrcp.f32 %v2180_v59 }
0x1ade   :  { %v2781_v61 = vpop.eup %2780 }
0x1adf   :  { %2184 = vst.msk [vmem:[%s3386_s2] sm:$0x3] %vm2183_vm13, %v2781_v61 }
0x1ae0   :  { %2189 = vsyncpa [#allocation3], 1 }
0x1ae1   :  { %2190 = vsyncpa [#allocation5], 1 }

</bundles_post_ra>
